<compile_context>
chip_gen: v7x
topology: tpu7x:2x2x1
jax: 0.10.0
libtpu: 0.0.40
codegen_flags: <defaults>
</compile_context>

<pallas_src>
import functools

import jax
import jax.numpy as jnp
import numpy as np
from jax.experimental import pallas as pl
from jax.experimental.pallas import tpu as pltpu


CONFIG = dict(
    vocab=128,
    hidden=32,
    layers=2,
    heads=4,
    intermediate=64,
    max_pos=32,
    type_vocab=2,
    nclasses=3,
    eps=1e-12,
)

# ------------------------- vector-operand slab layout -----------------------
# One (SLAB_ROWS, 128) f32 slab holds every small vector operand; rows are
# sliced with static indices inside the kernel.
_ROW_EMB_LN_G = 0
_ROW_EMB_LN_B = 1
_ROW_POOL_B = 2
_ROW_CLS_B = 3          # classifier bias, zero-padded to H lanes
_LAYER_BASE = 4
_ROWS_PER_LAYER = 8     # bqkv, bo, ln1g, ln1b, b1, b2, ln2g, ln2b
_SLAB_ROWS = 24         # 4 + 2*8 = 20, padded up to a multiple of 8


# ------------------------------ fused kernel -------------------------------

def _fused_bert_kernel(
    emb_ref, mask_ref, slab_ref,
    wqkv_ref, wo_ref, w1_ref, w2_ref, wp_ref, wc_ref,
    out_ref,
    *, batch, seq, nlayers, nheads, eps):
  """Single invocation: whole flattened batch processed in VMEM."""
  S2, H = emb_ref.shape                       # (B*S, H)
  I = w1_ref.shape[2]
  DH = H // nheads
  scale = 1.0 / float(DH) ** 0.5

  slab = slab_ref[...]                        # (SLAB_ROWS, 128), loaded once

  def row(r, width):
    return slab[r:r + 1, 0:width]             # (1, width) static slice

  def layernorm(x, g, b):
    mean = jnp.mean(x, axis=-1, keepdims=True)
    var = jnp.mean(jnp.square(x - mean), axis=-1, keepdims=True)
    return (x - mean) * jax.lax.rsqrt(var + eps) * g + b

  # Embedding LayerNorm over all B*S rows at once.
  x = layernorm(emb_ref[...].astype(jnp.float32),
                row(_ROW_EMB_LN_G, H), row(_ROW_EMB_LN_B, H))        # (S2, H)
  m = mask_ref[...].astype(jnp.float32)       # (S2, S2) block-diagonal additive

  for l in range(nlayers):                    # unrolled (L=2)
    base = _LAYER_BASE + l * _ROWS_PER_LAYER
    # ---- fused QKV projection: one (S2,H) @ (H,3H) matmul ----
    qkv = jnp.dot(x, wqkv_ref[l],
                  preferred_element_type=jnp.float32) + row(base + 0, 3 * H)

    # ---- multi-head attention; batch handled by the block-diagonal mask ----
    ctx_heads = []
    for h in range(nheads):                   # static lane slices, no transposes
      q = qkv[:, h * DH:(h + 1) * DH]
      k = qkv[:, H + h * DH:H + (h + 1) * DH]
      v = qkv[:, 2 * H + h * DH:2 * H + (h + 1) * DH]
      s = jax.lax.dot_general(q, k, (((1,), (1,)), ((), ())),
                              preferred_element_type=jnp.float32) * scale + m
      # Max-subtraction dropped: scores are tiny and exp(-10000) underflows
      # cleanly to 0 in f32 (accepted micro-opt from the perf review).
      p = jnp.exp(s)
      p = p * pl.reciprocal(jnp.sum(p, axis=-1, keepdims=True), approx=True)
      ctx_heads.append(jnp.dot(p, v, preferred_element_type=jnp.float32))
    ctx = jnp.concatenate(ctx_heads, axis=1)                          # (S2, H)
    attn_out = jnp.dot(ctx, wo_ref[l],
                       preferred_element_type=jnp.float32) + row(base + 1, H)

    x = layernorm(attn_out + x, row(base + 2, H), row(base + 3, H))

    # ---- feed-forward ----
    h1 = jnp.dot(x, w1_ref[l], preferred_element_type=jnp.float32) + row(base + 4, I)
    # TODO(synk): HF BERT default GELU is the exact erf form; tanh approximation used here.
    h1 = jax.nn.gelu(h1, approximate=True)
    h2 = jnp.dot(h1, w2_ref[l], preferred_element_type=jnp.float32) + row(base + 5, H)
    x = layernorm(h2 + x, row(base + 6, H), row(base + 7, H))

  # ---- pooler: tanh(W @ CLS + b) for every batch element ----
  cls = jnp.concatenate([x[b * seq:b * seq + 1, :] for b in range(batch)],
                        axis=0)                                        # (B, H)
  pooled = jnp.tanh(jnp.dot(cls, wp_ref[...],
                            preferred_element_type=jnp.float32) + row(_ROW_POOL_B, H))

  # dropout(pooled): eval-mode dropout is identity (deterministic forward)
  # TODO(synk): training-mode stochastic dropout (pltpu.prng_*) not implemented.

  # ---- 'dil' classifier head (weight/bias pre-padded to H columns) ----
  y_full = jnp.dot(pooled, wc_ref[...],
                   preferred_element_type=jnp.float32) + row(_ROW_CLS_B, H)  # (B, H)

  # ---- F.normalize(pooled, dim=1) == x * rsqrt(max(ss, eps^2)) ----
  ss = jnp.sum(pooled * pooled, axis=-1, keepdims=True)
  normalized = pooled * jax.lax.rsqrt(jnp.maximum(ss, eps * eps))      # (B, H)

  # ---- single lane-dense output: [logits(pad to H) | normalized | zeros] ----
  pad = jnp.zeros((batch, out_ref.shape[1] - 2 * H), jnp.float32)
  out_ref[...] = jnp.concatenate([y_full, normalized, pad], axis=1)


# ------------------------------- Model glue --------------------------------

def init_params(cfg, key):
  keys = iter(jax.random.split(key, 64))

  def nrm(shape):
    return 0.02 * jax.random.normal(next(keys), shape, jnp.float32)

  H, I = cfg["hidden"], cfg["intermediate"]
  params = {
      "word_emb": nrm((cfg["vocab"], H)),
      "pos_emb": nrm((cfg["max_pos"], H)),
      "type_emb": nrm((cfg["type_vocab"], H)),
      "emb_ln_g": jnp.ones((H,), jnp.float32),
      "emb_ln_b": jnp.zeros((H,), jnp.float32),
      "layers": [],
      # pooler
      "wp": nrm((H, H)),
      "bp": jnp.zeros((H,), jnp.float32),
      # 'dil' classifier head: Linear(hidden, nclasses)
      "wcls": nrm((H, cfg["nclasses"])),
      "bcls": jnp.zeros((cfg["nclasses"],), jnp.float32),
  }
  for _ in range(cfg["layers"]):
    params["layers"].append({
        "wq": nrm((H, H)), "bq": jnp.zeros((H,), jnp.float32),
        "wk": nrm((H, H)), "bk": jnp.zeros((H,), jnp.float32),
        "wv": nrm((H, H)), "bv": jnp.zeros((H,), jnp.float32),
        "wo": nrm((H, H)), "bo": jnp.zeros((H,), jnp.float32),
        "ln1_g": jnp.ones((H,), jnp.float32), "ln1_b": jnp.zeros((H,), jnp.float32),
        "w1": nrm((H, I)), "b1": jnp.zeros((I,), jnp.float32),
        "w2": nrm((I, H)), "b2": jnp.zeros((H,), jnp.float32),
        "ln2_g": jnp.ones((H,), jnp.float32), "ln2_b": jnp.zeros((H,), jnp.float32),
    })
  return params


def _pad_row(v, width=128):
  v = jnp.asarray(v, jnp.float32).reshape(-1)
  return jnp.pad(v, (0, width - v.shape[0])).reshape(1, width)


def _pack_vector_slab(params, cfg):
  """Pack all small vector operands into one (SLAB_ROWS, 128) f32 slab."""
  rows = [
      _pad_row(params["emb_ln_g"]),
      _pad_row(params["emb_ln_b"]),
      _pad_row(params["bp"]),
      _pad_row(params["bcls"]),     # zero-padded -> logits lanes NC..H-1 stay 0
  ]
  for lyr in params["layers"]:
    rows += [
        _pad_row(jnp.concatenate([lyr["bq"], lyr["bk"], lyr["bv"]])),
        _pad_row(lyr["bo"]),
        _pad_row(lyr["ln1_g"]), _pad_row(lyr["ln1_b"]),
        _pad_row(lyr["b1"]), _pad_row(lyr["b2"]),
        _pad_row(lyr["ln2_g"]), _pad_row(lyr["ln2_b"]),
    ]
  slab = jnp.concatenate(rows, axis=0)
  pad_rows = _SLAB_ROWS - slab.shape[0]
  if pad_rows:
    slab = jnp.concatenate([slab, jnp.zeros((pad_rows, 128), jnp.float32)], axis=0)
  return slab


def _pack_matrices(params):
  layers = params["layers"]
  wqkv = jnp.stack([jnp.concatenate([l["wq"], l["wk"], l["wv"]], axis=1)
                    for l in layers])                     # (L, H, 3H)
  wo = jnp.stack([l["wo"] for l in layers])               # (L, H, H)
  w1 = jnp.stack([l["w1"] for l in layers])               # (L, H, I)
  w2 = jnp.stack([l["w2"] for l in layers])               # (L, I, H)
  return wqkv, wo, w1, w2


def net_forward(params, input_ids, segment_ids, input_mask, cfg=CONFIG):
  B, S = input_ids.shape
  H, NH, NC, L = cfg["hidden"], cfg["heads"], cfg["nclasses"], cfg["layers"]

  # ---- embeddings (gather = glue), flattened over batch ----
  pos_ids = jnp.arange(S)
  emb = (params["word_emb"][input_ids]
         + params["pos_emb"][pos_ids][None, :, :]
         + params["type_emb"][segment_ids])                           # (B, S, H)
  emb_flat = emb.reshape(B * S, H).astype(jnp.float32)

  # ---- block-diagonal additive attention mask over flattened tokens ----
  bidx = jnp.repeat(jnp.arange(B), S)                                  # (B*S,)
  same_batch = bidx[:, None] == bidx[None, :]
  key_valid = input_mask.reshape(B * S) > 0.5
  mask_add = jnp.where(same_batch & key_valid[None, :], 0.0, -10000.0
                       ).astype(jnp.float32)                           # (B*S, B*S)

  slab = _pack_vector_slab(params, cfg)                                # (24, 128)
  wqkv, wo, w1, w2 = _pack_matrices(params)
  wp = params["wp"]                                                    # (H, H)
  wc_pad = jnp.pad(params["wcls"], ((0, 0), (0, H - NC)))              # (H, H)

  out = pl.pallas_call(
      functools.partial(_fused_bert_kernel,
                        batch=B, seq=S, nlayers=L, nheads=NH, eps=cfg["eps"]),
      out_shape=jax.ShapeDtypeStruct((B, 128), jnp.float32),
  )(emb_flat, mask_add, slab, wqkv, wo, w1, w2, wp, wc_pad)

  return {"y": out[:, :NC],
          "normalized_pooled_rep": out[:, H:2 * H]}


# ---------------------- pure-JAX reference (for checking) -------------------

def net_forward_ref(params, input_ids, segment_ids, input_mask, cfg=CONFIG):
  B, S = input_ids.shape
  H, NH = cfg["hidden"], cfg["heads"]
  DH = H // NH
  scale = 1.0 / float(DH) ** 0.5
  hp = jax.lax.Precision.HIGHEST
  eps = cfg["eps"]

  def ln(x, g, b):
    mean = jnp.mean(x, -1, keepdims=True)
    var = jnp.mean(jnp.square(x - mean), -1, keepdims=True)
    return (x - mean) * jax.lax.rsqrt(var + eps) * g + b

  pos_ids = jnp.arange(S)
  emb = (params["word_emb"][input_ids] + params["pos_emb"][pos_ids][None]
         + params["type_emb"][segment_ids])
  x = ln(emb, params["emb_ln_g"], params["emb_ln_b"])                 # (B,S,H)
  neg = (1.0 - input_mask.astype(jnp.float32)) * -10000.0             # (B,S)

  for lyr in params["layers"]:
    q = jnp.einsum("bsh,hd->bsd", x, lyr["wq"], precision=hp) + lyr["bq"]
    k = jnp.einsum("bsh,hd->bsd", x, lyr["wk"], precision=hp) + lyr["bk"]
    v = jnp.einsum("bsh,hd->bsd", x, lyr["wv"], precision=hp) + lyr["bv"]
    heads = lambda t: t.reshape(B, S, NH, DH).transpose(0, 2, 1, 3)
    qh, kh, vh = heads(q), heads(k), heads(v)
    s = jnp.einsum("bhqd,bhkd->bhqk", qh, kh, precision=hp) * scale
    s = s + neg[:, None, None, :]
    p = jax.nn.softmax(s, axis=-1)
    ctx = jnp.einsum("bhqk,bhkd->bhqd", p, vh, precision=hp)
    ctx = ctx.transpose(0, 2, 1, 3).reshape(B, S, H)
    attn_out = jnp.einsum("bsh,hd->bsd", ctx, lyr["wo"], precision=hp) + lyr["bo"]
    x = ln(attn_out + x, lyr["ln1_g"], lyr["ln1_b"])
    h1 = jax.nn.gelu(
        jnp.einsum("bsh,hd->bsd", x, lyr["w1"], precision=hp) + lyr["b1"],
        approximate=True)
    h2 = jnp.einsum("bsd,dh->bsh", h1, lyr["w2"], precision=hp) + lyr["b2"]
    x = ln(h2 + x, lyr["ln2_g"], lyr["ln2_b"])

  cls = x[:, 0, :]
  pooled = jnp.tanh(jnp.dot(cls, params["wp"], precision=hp) + params["bp"])
  y = jnp.dot(pooled, params["wcls"], precision=hp) + params["bcls"]
  n = jnp.linalg.norm(pooled, axis=1, keepdims=True)
  return {"y": y, "normalized_pooled_rep": pooled / jnp.maximum(n, eps)}


# --------------------------------- driver -----------------------------------

if __name__ == "__main__":
  cfg = CONFIG
  B, S = 2, 8

  params = init_params(cfg, jax.random.PRNGKey(1))

  key = jax.random.PRNGKey(0)
  k1, k2 = jax.random.split(key)
  input_ids = jax.random.randint(k1, (B, S), 0, cfg["vocab"], dtype=jnp.int32)
  segment_ids = jax.random.randint(k2, (B, S), 0, cfg["type_vocab"], dtype=jnp.int32)
  input_mask = jnp.ones((B, S), jnp.float32).at[1, S - 2:].set(0.0)  # pad last 2 of ex. 1

  fwd = jax.jit(functools.partial(net_forward, cfg=cfg))
  out = fwd(params, input_ids, segment_ids, input_mask)
  jax.block_until_ready(out)

  assert out["y"].shape == (B, cfg["nclasses"])
  assert out["normalized_pooled_rep"].shape == (B, cfg["hidden"])

  ref = net_forward_ref(params, input_ids, segment_ids, input_mask, cfg)
  np.testing.assert_allclose(np.asarray(out["y"]), np.asarray(ref["y"]),
                             atol=2e-3, rtol=2e-3)
  np.testing.assert_allclose(np.asarray(out["normalized_pooled_rep"]),
                             np.asarray(ref["normalized_pooled_rep"]),
                             atol=2e-3, rtol=2e-3)

  print("KERNEL_OK")
</pallas_src>

<mosaic_0001>
module attributes {stable_mosaic.version = 11 : i64} {
  func.func @_fused_bert_kernel(%arg0: memref<16x32xf32, #tpu.memory_space<vmem>>, %arg1: memref<16x16xf32, #tpu.memory_space<vmem>>, %arg2: memref<24x128xf32, #tpu.memory_space<vmem>>, %arg3: memref<2x32x96xf32, #tpu.memory_space<vmem>>, %arg4: memref<2x32x32xf32, #tpu.memory_space<vmem>>, %arg5: memref<2x32x64xf32, #tpu.memory_space<vmem>>, %arg6: memref<2x64x32xf32, #tpu.memory_space<vmem>>, %arg7: memref<32x32xf32, #tpu.memory_space<vmem>>, %arg8: memref<32x32xf32, #tpu.memory_space<vmem>>, %arg9: memref<2x128xf32, #tpu.memory_space<vmem>>) attributes {dimension_semantics = [], scalar_prefetch = 0 : i64, scratch_operands = 0 : i64, tpu.core_type = #tpu.core_type<tc>} {
    %c0 = arith.constant 0 : index
    %c0_0 = arith.constant 0 : index
    %0 = vector.load %arg2[%c0, %c0_0] : memref<24x128xf32, #tpu.memory_space<vmem>>, vector<24x128xf32>
    %c0_1 = arith.constant 0 : index
    %c0_2 = arith.constant 0 : index
    %1 = vector.load %arg0[%c0_1, %c0_2] : memref<16x32xf32, #tpu.memory_space<vmem>>, vector<16x32xf32>
    %2 = vector.extract_strided_slice %0 {offsets = [0, 0], sizes = [1, 32], strides = [1, 1]} : vector<24x128xf32> to vector<1x32xf32>
    %3 = vector.extract_strided_slice %0 {offsets = [1, 0], sizes = [1, 32], strides = [1, 1]} : vector<24x128xf32> to vector<1x32xf32>
    %cst = arith.constant dense<0.000000e+00> : vector<16xf32>
    %4 = vector.multi_reduction <add>, %1, %cst [1] : vector<16x32xf32> to vector<16xf32>
    %5 = vector.shape_cast %4 : vector<16xf32> to vector<16x1xf32>
    %cst_3 = arith.constant 3.200000e+01 : f32
    %6 = vector.broadcast %cst_3 : f32 to vector<16x1xf32>
    %7 = arith.divf %5, %6 : vector<16x1xf32>
    %8 = vector.broadcast %7 : vector<16x1xf32> to vector<16x32xf32>
    %9 = arith.subf %1, %8 : vector<16x32xf32>
    %10 = arith.mulf %9, %9 : vector<16x32xf32>
    %cst_4 = arith.constant dense<0.000000e+00> : vector<16xf32>
    %11 = vector.multi_reduction <add>, %10, %cst_4 [1] : vector<16x32xf32> to vector<16xf32>
    %12 = vector.shape_cast %11 : vector<16xf32> to vector<16x1xf32>
    %cst_5 = arith.constant 3.200000e+01 : f32
    %13 = vector.broadcast %cst_5 : f32 to vector<16x1xf32>
    %14 = arith.divf %12, %13 : vector<16x1xf32>
    %15 = vector.broadcast %7 : vector<16x1xf32> to vector<16x32xf32>
    %16 = arith.subf %1, %15 : vector<16x32xf32>
    %cst_6 = arith.constant 9.99999996E-13 : f32
    %17 = vector.broadcast %cst_6 : f32 to vector<16x1xf32>
    %18 = arith.addf %14, %17 : vector<16x1xf32>
    %19 = math.rsqrt %18 : vector<16x1xf32>
    %20 = vector.broadcast %19 : vector<16x1xf32> to vector<16x32xf32>
    %21 = arith.mulf %16, %20 : vector<16x32xf32>
    %22 = vector.broadcast %2 : vector<1x32xf32> to vector<16x32xf32>
    %23 = arith.mulf %21, %22 : vector<16x32xf32>
    %24 = vector.broadcast %3 : vector<1x32xf32> to vector<16x32xf32>
    %25 = arith.addf %23, %24 : vector<16x32xf32>
    %c0_7 = arith.constant 0 : index
    %c0_8 = arith.constant 0 : index
    %26 = vector.load %arg1[%c0_7, %c0_8] : memref<16x16xf32, #tpu.memory_space<vmem>>, vector<16x16xf32>
    %c0_9 = arith.constant 0 : index
    %c0_10 = arith.constant 0 : index
    %c0_11 = arith.constant 0 : index
    %27 = vector.load %arg3[%c0_9, %c0_10, %c0_11] : memref<2x32x96xf32, #tpu.memory_space<vmem>>, vector<1x32x96xf32>
    %28 = vector.shape_cast %27 : vector<1x32x96xf32> to vector<32x96xf32>
    %cst_12 = arith.constant dense<0.000000e+00> : vector<16x96xf32>
    %29 = tpu.matmul %25, %28, %cst_12 {dimension_numbers = #tpu.dot_dimension_numbers<[1], [0], [0], [1], [0, 0, 1, 1], [], []>} : vector<16x32xf32>, vector<32x96xf32>, vector<16x96xf32> -> vector<16x96xf32>
    %30 = vector.extract_strided_slice %0 {offsets = [4, 0], sizes = [1, 96], strides = [1, 1]} : vector<24x128xf32> to vector<1x96xf32>
    %31 = vector.broadcast %30 : vector<1x96xf32> to vector<16x96xf32>
    %32 = arith.addf %29, %31 : vector<16x96xf32>
    %33 = vector.extract_strided_slice %32 {offsets = [0, 0], sizes = [16, 8], strides = [1, 1]} : vector<16x96xf32> to vector<16x8xf32>
    %34 = vector.extract_strided_slice %32 {offsets = [0, 32], sizes = [16, 8], strides = [1, 1]} : vector<16x96xf32> to vector<16x8xf32>
    %35 = vector.extract_strided_slice %32 {offsets = [0, 64], sizes = [16, 8], strides = [1, 1]} : vector<16x96xf32> to vector<16x8xf32>
    %cst_13 = arith.constant dense<0.000000e+00> : vector<16x16xf32>
    %36 = tpu.matmul %33, %34, %cst_13 {dimension_numbers = #tpu.dot_dimension_numbers<[1], [1], [0], [0], [0, 0, 1, 0], [], []>} : vector<16x8xf32>, vector<16x8xf32>, vector<16x16xf32> -> vector<16x16xf32>
    %cst_14 = arith.constant 0.353553385 : f32
    %37 = vector.broadcast %cst_14 : f32 to vector<16x16xf32>
    %38 = arith.mulf %36, %37 : vector<16x16xf32>
    %39 = arith.addf %38, %26 : vector<16x16xf32>
    %40 = math.exp %39 : vector<16x16xf32>
    %cst_15 = arith.constant dense<0.000000e+00> : vector<16xf32>
    %41 = vector.multi_reduction <add>, %40, %cst_15 [1] : vector<16x16xf32> to vector<16xf32>
    %42 = vector.shape_cast %41 : vector<16xf32> to vector<16x1xf32>
    %43 = tpu.reciprocal %42 {approx = true} : vector<16x1xf32> -> vector<16x1xf32>
    %44 = vector.broadcast %43 : vector<16x1xf32> to vector<16x16xf32>
    %45 = arith.mulf %40, %44 : vector<16x16xf32>
    %cst_16 = arith.constant dense<0.000000e+00> : vector<16x8xf32>
    %46 = tpu.matmul %45, %35, %cst_16 {dimension_numbers = #tpu.dot_dimension_numbers<[1], [0], [0], [1], [0, 0, 1, 1], [], []>} : vector<16x16xf32>, vector<16x8xf32>, vector<16x8xf32> -> vector<16x8xf32>
    %47 = vector.extract_strided_slice %32 {offsets = [0, 8], sizes = [16, 8], strides = [1, 1]} : vector<16x96xf32> to vector<16x8xf32>
    %48 = vector.extract_strided_slice %32 {offsets = [0, 40], sizes = [16, 8], strides = [1, 1]} : vector<16x96xf32> to vector<16x8xf32>
    %49 = vector.extract_strided_slice %32 {offsets = [0, 72], sizes = [16, 8], strides = [1, 1]} : vector<16x96xf32> to vector<16x8xf32>
    %cst_17 = arith.constant dense<0.000000e+00> : vector<16x16xf32>
    %50 = tpu.matmul %47, %48, %cst_17 {dimension_numbers = #tpu.dot_dimension_numbers<[1], [1], [0], [0], [0, 0, 1, 0], [], []>} : vector<16x8xf32>, vector<16x8xf32>, vector<16x16xf32> -> vector<16x16xf32>
    %cst_18 = arith.constant 0.353553385 : f32
    %51 = vector.broadcast %cst_18 : f32 to vector<16x16xf32>
    %52 = arith.mulf %50, %51 : vector<16x16xf32>
    %53 = arith.addf %52, %26 : vector<16x16xf32>
    %54 = math.exp %53 : vector<16x16xf32>
    %cst_19 = arith.constant dense<0.000000e+00> : vector<16xf32>
    %55 = vector.multi_reduction <add>, %54, %cst_19 [1] : vector<16x16xf32> to vector<16xf32>
    %56 = vector.shape_cast %55 : vector<16xf32> to vector<16x1xf32>
    %57 = tpu.reciprocal %56 {approx = true} : vector<16x1xf32> -> vector<16x1xf32>
    %58 = vector.broadcast %57 : vector<16x1xf32> to vector<16x16xf32>
    %59 = arith.mulf %54, %58 : vector<16x16xf32>
    %cst_20 = arith.constant dense<0.000000e+00> : vector<16x8xf32>
    %60 = tpu.matmul %59, %49, %cst_20 {dimension_numbers = #tpu.dot_dimension_numbers<[1], [0], [0], [1], [0, 0, 1, 1], [], []>} : vector<16x16xf32>, vector<16x8xf32>, vector<16x8xf32> -> vector<16x8xf32>
    %61 = vector.extract_strided_slice %32 {offsets = [0, 16], sizes = [16, 8], strides = [1, 1]} : vector<16x96xf32> to vector<16x8xf32>
    %62 = vector.extract_strided_slice %32 {offsets = [0, 48], sizes = [16, 8], strides = [1, 1]} : vector<16x96xf32> to vector<16x8xf32>
    %63 = vector.extract_strided_slice %32 {offsets = [0, 80], sizes = [16, 8], strides = [1, 1]} : vector<16x96xf32> to vector<16x8xf32>
    %cst_21 = arith.constant dense<0.000000e+00> : vector<16x16xf32>
    %64 = tpu.matmul %61, %62, %cst_21 {dimension_numbers = #tpu.dot_dimension_numbers<[1], [1], [0], [0], [0, 0, 1, 0], [], []>} : vector<16x8xf32>, vector<16x8xf32>, vector<16x16xf32> -> vector<16x16xf32>
    %cst_22 = arith.constant 0.353553385 : f32
    %65 = vector.broadcast %cst_22 : f32 to vector<16x16xf32>
    %66 = arith.mulf %64, %65 : vector<16x16xf32>
    %67 = arith.addf %66, %26 : vector<16x16xf32>
    %68 = math.exp %67 : vector<16x16xf32>
    %cst_23 = arith.constant dense<0.000000e+00> : vector<16xf32>
    %69 = vector.multi_reduction <add>, %68, %cst_23 [1] : vector<16x16xf32> to vector<16xf32>
    %70 = vector.shape_cast %69 : vector<16xf32> to vector<16x1xf32>
    %71 = tpu.reciprocal %70 {approx = true} : vector<16x1xf32> -> vector<16x1xf32>
    %72 = vector.broadcast %71 : vector<16x1xf32> to vector<16x16xf32>
    %73 = arith.mulf %68, %72 : vector<16x16xf32>
    %cst_24 = arith.constant dense<0.000000e+00> : vector<16x8xf32>
    %74 = tpu.matmul %73, %63, %cst_24 {dimension_numbers = #tpu.dot_dimension_numbers<[1], [0], [0], [1], [0, 0, 1, 1], [], []>} : vector<16x16xf32>, vector<16x8xf32>, vector<16x8xf32> -> vector<16x8xf32>
    %75 = vector.extract_strided_slice %32 {offsets = [0, 24], sizes = [16, 8], strides = [1, 1]} : vector<16x96xf32> to vector<16x8xf32>
    %76 = vector.extract_strided_slice %32 {offsets = [0, 56], sizes = [16, 8], strides = [1, 1]} : vector<16x96xf32> to vector<16x8xf32>
    %77 = vector.extract_strided_slice %32 {offsets = [0, 88], sizes = [16, 8], strides = [1, 1]} : vector<16x96xf32> to vector<16x8xf32>
    %cst_25 = arith.constant dense<0.000000e+00> : vector<16x16xf32>
    %78 = tpu.matmul %75, %76, %cst_25 {dimension_numbers = #tpu.dot_dimension_numbers<[1], [1], [0], [0], [0, 0, 1, 0], [], []>} : vector<16x8xf32>, vector<16x8xf32>, vector<16x16xf32> -> vector<16x16xf32>
    %cst_26 = arith.constant 0.353553385 : f32
    %79 = vector.broadcast %cst_26 : f32 to vector<16x16xf32>
    %80 = arith.mulf %78, %79 : vector<16x16xf32>
    %81 = arith.addf %80, %26 : vector<16x16xf32>
    %82 = math.exp %81 : vector<16x16xf32>
    %cst_27 = arith.constant dense<0.000000e+00> : vector<16xf32>
    %83 = vector.multi_reduction <add>, %82, %cst_27 [1] : vector<16x16xf32> to vector<16xf32>
    %84 = vector.shape_cast %83 : vector<16xf32> to vector<16x1xf32>
    %85 = tpu.reciprocal %84 {approx = true} : vector<16x1xf32> -> vector<16x1xf32>
    %86 = vector.broadcast %85 : vector<16x1xf32> to vector<16x16xf32>
    %87 = arith.mulf %82, %86 : vector<16x16xf32>
    %cst_28 = arith.constant dense<0.000000e+00> : vector<16x8xf32>
    %88 = tpu.matmul %87, %77, %cst_28 {dimension_numbers = #tpu.dot_dimension_numbers<[1], [0], [0], [1], [0, 0, 1, 1], [], []>} : vector<16x16xf32>, vector<16x8xf32>, vector<16x8xf32> -> vector<16x8xf32>
    %89 = tpu.concatenate %46, %60, %74, %88 in 1 : vector<16x8xf32>, vector<16x8xf32>, vector<16x8xf32>, vector<16x8xf32> -> vector<16x32xf32>
    %c0_29 = arith.constant 0 : index
    %c0_30 = arith.constant 0 : index
    %c0_31 = arith.constant 0 : index
    %90 = vector.load %arg4[%c0_29, %c0_30, %c0_31] : memref<2x32x32xf32, #tpu.memory_space<vmem>>, vector<1x32x32xf32>
    %91 = vector.shape_cast %90 : vector<1x32x32xf32> to vector<32x32xf32>
    %cst_32 = arith.constant dense<0.000000e+00> : vector<16x32xf32>
    %92 = tpu.matmul %89, %91, %cst_32 {dimension_numbers = #tpu.dot_dimension_numbers<[1], [0], [0], [1], [0, 0, 1, 1], [], []>} : vector<16x32xf32>, vector<32x32xf32>, vector<16x32xf32> -> vector<16x32xf32>
    %93 = vector.extract_strided_slice %0 {offsets = [5, 0], sizes = [1, 32], strides = [1, 1]} : vector<24x128xf32> to vector<1x32xf32>
    %94 = vector.broadcast %93 : vector<1x32xf32> to vector<16x32xf32>
    %95 = arith.addf %92, %94 : vector<16x32xf32>
    %96 = arith.addf %95, %25 : vector<16x32xf32>
    %97 = vector.extract_strided_slice %0 {offsets = [6, 0], sizes = [1, 32], strides = [1, 1]} : vector<24x128xf32> to vector<1x32xf32>
    %98 = vector.extract_strided_slice %0 {offsets = [7, 0], sizes = [1, 32], strides = [1, 1]} : vector<24x128xf32> to vector<1x32xf32>
    %cst_33 = arith.constant dense<0.000000e+00> : vector<16xf32>
    %99 = vector.multi_reduction <add>, %96, %cst_33 [1] : vector<16x32xf32> to vector<16xf32>
    %100 = vector.shape_cast %99 : vector<16xf32> to vector<16x1xf32>
    %cst_34 = arith.constant 3.200000e+01 : f32
    %101 = vector.broadcast %cst_34 : f32 to vector<16x1xf32>
    %102 = arith.divf %100, %101 : vector<16x1xf32>
    %103 = vector.broadcast %102 : vector<16x1xf32> to vector<16x32xf32>
    %104 = arith.subf %96, %103 : vector<16x32xf32>
    %105 = arith.mulf %104, %104 : vector<16x32xf32>
    %cst_35 = arith.constant dense<0.000000e+00> : vector<16xf32>
    %106 = vector.multi_reduction <add>, %105, %cst_35 [1] : vector<16x32xf32> to vector<16xf32>
    %107 = vector.shape_cast %106 : vector<16xf32> to vector<16x1xf32>
    %cst_36 = arith.constant 3.200000e+01 : f32
    %108 = vector.broadcast %cst_36 : f32 to vector<16x1xf32>
    %109 = arith.divf %107, %108 : vector<16x1xf32>
    %110 = vector.broadcast %102 : vector<16x1xf32> to vector<16x32xf32>
    %111 = arith.subf %96, %110 : vector<16x32xf32>
    %cst_37 = arith.constant 9.99999996E-13 : f32
    %112 = vector.broadcast %cst_37 : f32 to vector<16x1xf32>
    %113 = arith.addf %109, %112 : vector<16x1xf32>
    %114 = math.rsqrt %113 : vector<16x1xf32>
    %115 = vector.broadcast %114 : vector<16x1xf32> to vector<16x32xf32>
    %116 = arith.mulf %111, %115 : vector<16x32xf32>
    %117 = vector.broadcast %97 : vector<1x32xf32> to vector<16x32xf32>
    %118 = arith.mulf %116, %117 : vector<16x32xf32>
    %119 = vector.broadcast %98 : vector<1x32xf32> to vector<16x32xf32>
    %120 = arith.addf %118, %119 : vector<16x32xf32>
    %c0_38 = arith.constant 0 : index
    %c0_39 = arith.constant 0 : index
    %c0_40 = arith.constant 0 : index
    %121 = vector.load %arg5[%c0_38, %c0_39, %c0_40] : memref<2x32x64xf32, #tpu.memory_space<vmem>>, vector<1x32x64xf32>
    %122 = vector.shape_cast %121 : vector<1x32x64xf32> to vector<32x64xf32>
    %cst_41 = arith.constant dense<0.000000e+00> : vector<16x64xf32>
    %123 = tpu.matmul %120, %122, %cst_41 {dimension_numbers = #tpu.dot_dimension_numbers<[1], [0], [0], [1], [0, 0, 1, 1], [], []>} : vector<16x32xf32>, vector<32x64xf32>, vector<16x64xf32> -> vector<16x64xf32>
    %124 = vector.extract_strided_slice %0 {offsets = [8, 0], sizes = [1, 64], strides = [1, 1]} : vector<24x128xf32> to vector<1x64xf32>
    %125 = vector.broadcast %124 : vector<1x64xf32> to vector<16x64xf32>
    %126 = arith.addf %123, %125 : vector<16x64xf32>
    %127 = arith.mulf %126, %126 : vector<16x64xf32>
    %128 = arith.mulf %126, %127 : vector<16x64xf32>
    %cst_42 = arith.constant 4.471500e-02 : f32
    %129 = vector.broadcast %cst_42 : f32 to vector<16x64xf32>
    %130 = arith.mulf %129, %128 : vector<16x64xf32>
    %131 = arith.addf %126, %130 : vector<16x64xf32>
    %cst_43 = arith.constant 0.797884583 : f32
    %132 = vector.broadcast %cst_43 : f32 to vector<16x64xf32>
    %133 = arith.mulf %132, %131 : vector<16x64xf32>
    %134 = math.tanh %133 : vector<16x64xf32>
    %cst_44 = arith.constant 1.000000e+00 : f32
    %135 = vector.broadcast %cst_44 : f32 to vector<16x64xf32>
    %136 = arith.addf %135, %134 : vector<16x64xf32>
    %cst_45 = arith.constant 5.000000e-01 : f32
    %137 = vector.broadcast %cst_45 : f32 to vector<16x64xf32>
    %138 = arith.mulf %137, %136 : vector<16x64xf32>
    %139 = arith.mulf %126, %138 : vector<16x64xf32>
    %c0_46 = arith.constant 0 : index
    %c0_47 = arith.constant 0 : index
    %c0_48 = arith.constant 0 : index
    %140 = vector.load %arg6[%c0_46, %c0_47, %c0_48] : memref<2x64x32xf32, #tpu.memory_space<vmem>>, vector<1x64x32xf32>
    %141 = vector.shape_cast %140 : vector<1x64x32xf32> to vector<64x32xf32>
    %cst_49 = arith.constant dense<0.000000e+00> : vector<16x32xf32>
    %142 = tpu.matmul %139, %141, %cst_49 {dimension_numbers = #tpu.dot_dimension_numbers<[1], [0], [0], [1], [0, 0, 1, 1], [], []>} : vector<16x64xf32>, vector<64x32xf32>, vector<16x32xf32> -> vector<16x32xf32>
    %143 = vector.extract_strided_slice %0 {offsets = [9, 0], sizes = [1, 32], strides = [1, 1]} : vector<24x128xf32> to vector<1x32xf32>
    %144 = vector.broadcast %143 : vector<1x32xf32> to vector<16x32xf32>
    %145 = arith.addf %142, %144 : vector<16x32xf32>
    %146 = arith.addf %145, %120 : vector<16x32xf32>
    %147 = vector.extract_strided_slice %0 {offsets = [10, 0], sizes = [1, 32], strides = [1, 1]} : vector<24x128xf32> to vector<1x32xf32>
    %148 = vector.extract_strided_slice %0 {offsets = [11, 0], sizes = [1, 32], strides = [1, 1]} : vector<24x128xf32> to vector<1x32xf32>
    %cst_50 = arith.constant dense<0.000000e+00> : vector<16xf32>
    %149 = vector.multi_reduction <add>, %146, %cst_50 [1] : vector<16x32xf32> to vector<16xf32>
    %150 = vector.shape_cast %149 : vector<16xf32> to vector<16x1xf32>
    %cst_51 = arith.constant 3.200000e+01 : f32
    %151 = vector.broadcast %cst_51 : f32 to vector<16x1xf32>
    %152 = arith.divf %150, %151 : vector<16x1xf32>
    %153 = vector.broadcast %152 : vector<16x1xf32> to vector<16x32xf32>
    %154 = arith.subf %146, %153 : vector<16x32xf32>
    %155 = arith.mulf %154, %154 : vector<16x32xf32>
    %cst_52 = arith.constant dense<0.000000e+00> : vector<16xf32>
    %156 = vector.multi_reduction <add>, %155, %cst_52 [1] : vector<16x32xf32> to vector<16xf32>
    %157 = vector.shape_cast %156 : vector<16xf32> to vector<16x1xf32>
    %cst_53 = arith.constant 3.200000e+01 : f32
    %158 = vector.broadcast %cst_53 : f32 to vector<16x1xf32>
    %159 = arith.divf %157, %158 : vector<16x1xf32>
    %160 = vector.broadcast %152 : vector<16x1xf32> to vector<16x32xf32>
    %161 = arith.subf %146, %160 : vector<16x32xf32>
    %cst_54 = arith.constant 9.99999996E-13 : f32
    %162 = vector.broadcast %cst_54 : f32 to vector<16x1xf32>
    %163 = arith.addf %159, %162 : vector<16x1xf32>
    %164 = math.rsqrt %163 : vector<16x1xf32>
    %165 = vector.broadcast %164 : vector<16x1xf32> to vector<16x32xf32>
    %166 = arith.mulf %161, %165 : vector<16x32xf32>
    %167 = vector.broadcast %147 : vector<1x32xf32> to vector<16x32xf32>
    %168 = arith.mulf %166, %167 : vector<16x32xf32>
    %169 = vector.broadcast %148 : vector<1x32xf32> to vector<16x32xf32>
    %170 = arith.addf %168, %169 : vector<16x32xf32>
    %c1 = arith.constant 1 : index
    %c0_55 = arith.constant 0 : index
    %c0_56 = arith.constant 0 : index
    %171 = vector.load %arg3[%c1, %c0_55, %c0_56] : memref<2x32x96xf32, #tpu.memory_space<vmem>>, vector<1x32x96xf32>
    %172 = vector.shape_cast %171 : vector<1x32x96xf32> to vector<32x96xf32>
    %cst_57 = arith.constant dense<0.000000e+00> : vector<16x96xf32>
    %173 = tpu.matmul %170, %172, %cst_57 {dimension_numbers = #tpu.dot_dimension_numbers<[1], [0], [0], [1], [0, 0, 1, 1], [], []>} : vector<16x32xf32>, vector<32x96xf32>, vector<16x96xf32> -> vector<16x96xf32>
    %174 = vector.extract_strided_slice %0 {offsets = [12, 0], sizes = [1, 96], strides = [1, 1]} : vector<24x128xf32> to vector<1x96xf32>
    %175 = vector.broadcast %174 : vector<1x96xf32> to vector<16x96xf32>
    %176 = arith.addf %173, %175 : vector<16x96xf32>
    %177 = vector.extract_strided_slice %176 {offsets = [0, 0], sizes = [16, 8], strides = [1, 1]} : vector<16x96xf32> to vector<16x8xf32>
    %178 = vector.extract_strided_slice %176 {offsets = [0, 32], sizes = [16, 8], strides = [1, 1]} : vector<16x96xf32> to vector<16x8xf32>
    %179 = vector.extract_strided_slice %176 {offsets = [0, 64], sizes = [16, 8], strides = [1, 1]} : vector<16x96xf32> to vector<16x8xf32>
    %cst_58 = arith.constant dense<0.000000e+00> : vector<16x16xf32>
    %180 = tpu.matmul %177, %178, %cst_58 {dimension_numbers = #tpu.dot_dimension_numbers<[1], [1], [0], [0], [0, 0, 1, 0], [], []>} : vector<16x8xf32>, vector<16x8xf32>, vector<16x16xf32> -> vector<16x16xf32>
    %cst_59 = arith.constant 0.353553385 : f32
    %181 = vector.broadcast %cst_59 : f32 to vector<16x16xf32>
    %182 = arith.mulf %180, %181 : vector<16x16xf32>
    %183 = arith.addf %182, %26 : vector<16x16xf32>
    %184 = math.exp %183 : vector<16x16xf32>
    %cst_60 = arith.constant dense<0.000000e+00> : vector<16xf32>
    %185 = vector.multi_reduction <add>, %184, %cst_60 [1] : vector<16x16xf32> to vector<16xf32>
    %186 = vector.shape_cast %185 : vector<16xf32> to vector<16x1xf32>
    %187 = tpu.reciprocal %186 {approx = true} : vector<16x1xf32> -> vector<16x1xf32>
    %188 = vector.broadcast %187 : vector<16x1xf32> to vector<16x16xf32>
    %189 = arith.mulf %184, %188 : vector<16x16xf32>
    %cst_61 = arith.constant dense<0.000000e+00> : vector<16x8xf32>
    %190 = tpu.matmul %189, %179, %cst_61 {dimension_numbers = #tpu.dot_dimension_numbers<[1], [0], [0], [1], [0, 0, 1, 1], [], []>} : vector<16x16xf32>, vector<16x8xf32>, vector<16x8xf32> -> vector<16x8xf32>
    %191 = vector.extract_strided_slice %176 {offsets = [0, 8], sizes = [16, 8], strides = [1, 1]} : vector<16x96xf32> to vector<16x8xf32>
    %192 = vector.extract_strided_slice %176 {offsets = [0, 40], sizes = [16, 8], strides = [1, 1]} : vector<16x96xf32> to vector<16x8xf32>
    %193 = vector.extract_strided_slice %176 {offsets = [0, 72], sizes = [16, 8], strides = [1, 1]} : vector<16x96xf32> to vector<16x8xf32>
    %cst_62 = arith.constant dense<0.000000e+00> : vector<16x16xf32>
    %194 = tpu.matmul %191, %192, %cst_62 {dimension_numbers = #tpu.dot_dimension_numbers<[1], [1], [0], [0], [0, 0, 1, 0], [], []>} : vector<16x8xf32>, vector<16x8xf32>, vector<16x16xf32> -> vector<16x16xf32>
    %cst_63 = arith.constant 0.353553385 : f32
    %195 = vector.broadcast %cst_63 : f32 to vector<16x16xf32>
    %196 = arith.mulf %194, %195 : vector<16x16xf32>
    %197 = arith.addf %196, %26 : vector<16x16xf32>
    %198 = math.exp %197 : vector<16x16xf32>
    %cst_64 = arith.constant dense<0.000000e+00> : vector<16xf32>
    %199 = vector.multi_reduction <add>, %198, %cst_64 [1] : vector<16x16xf32> to vector<16xf32>
    %200 = vector.shape_cast %199 : vector<16xf32> to vector<16x1xf32>
    %201 = tpu.reciprocal %200 {approx = true} : vector<16x1xf32> -> vector<16x1xf32>
    %202 = vector.broadcast %201 : vector<16x1xf32> to vector<16x16xf32>
    %203 = arith.mulf %198, %202 : vector<16x16xf32>
    %cst_65 = arith.constant dense<0.000000e+00> : vector<16x8xf32>
    %204 = tpu.matmul %203, %193, %cst_65 {dimension_numbers = #tpu.dot_dimension_numbers<[1], [0], [0], [1], [0, 0, 1, 1], [], []>} : vector<16x16xf32>, vector<16x8xf32>, vector<16x8xf32> -> vector<16x8xf32>
    %205 = vector.extract_strided_slice %176 {offsets = [0, 16], sizes = [16, 8], strides = [1, 1]} : vector<16x96xf32> to vector<16x8xf32>
    %206 = vector.extract_strided_slice %176 {offsets = [0, 48], sizes = [16, 8], strides = [1, 1]} : vector<16x96xf32> to vector<16x8xf32>
    %207 = vector.extract_strided_slice %176 {offsets = [0, 80], sizes = [16, 8], strides = [1, 1]} : vector<16x96xf32> to vector<16x8xf32>
    %cst_66 = arith.constant dense<0.000000e+00> : vector<16x16xf32>
    %208 = tpu.matmul %205, %206, %cst_66 {dimension_numbers = #tpu.dot_dimension_numbers<[1], [1], [0], [0], [0, 0, 1, 0], [], []>} : vector<16x8xf32>, vector<16x8xf32>, vector<16x16xf32> -> vector<16x16xf32>
    %cst_67 = arith.constant 0.353553385 : f32
    %209 = vector.broadcast %cst_67 : f32 to vector<16x16xf32>
    %210 = arith.mulf %208, %209 : vector<16x16xf32>
    %211 = arith.addf %210, %26 : vector<16x16xf32>
    %212 = math.exp %211 : vector<16x16xf32>
    %cst_68 = arith.constant dense<0.000000e+00> : vector<16xf32>
    %213 = vector.multi_reduction <add>, %212, %cst_68 [1] : vector<16x16xf32> to vector<16xf32>
    %214 = vector.shape_cast %213 : vector<16xf32> to vector<16x1xf32>
    %215 = tpu.reciprocal %214 {approx = true} : vector<16x1xf32> -> vector<16x1xf32>
    %216 = vector.broadcast %215 : vector<16x1xf32> to vector<16x16xf32>
    %217 = arith.mulf %212, %216 : vector<16x16xf32>
    %cst_69 = arith.constant dense<0.000000e+00> : vector<16x8xf32>
    %218 = tpu.matmul %217, %207, %cst_69 {dimension_numbers = #tpu.dot_dimension_numbers<[1], [0], [0], [1], [0, 0, 1, 1], [], []>} : vector<16x16xf32>, vector<16x8xf32>, vector<16x8xf32> -> vector<16x8xf32>
    %219 = vector.extract_strided_slice %176 {offsets = [0, 24], sizes = [16, 8], strides = [1, 1]} : vector<16x96xf32> to vector<16x8xf32>
    %220 = vector.extract_strided_slice %176 {offsets = [0, 56], sizes = [16, 8], strides = [1, 1]} : vector<16x96xf32> to vector<16x8xf32>
    %221 = vector.extract_strided_slice %176 {offsets = [0, 88], sizes = [16, 8], strides = [1, 1]} : vector<16x96xf32> to vector<16x8xf32>
    %cst_70 = arith.constant dense<0.000000e+00> : vector<16x16xf32>
    %222 = tpu.matmul %219, %220, %cst_70 {dimension_numbers = #tpu.dot_dimension_numbers<[1], [1], [0], [0], [0, 0, 1, 0], [], []>} : vector<16x8xf32>, vector<16x8xf32>, vector<16x16xf32> -> vector<16x16xf32>
    %cst_71 = arith.constant 0.353553385 : f32
    %223 = vector.broadcast %cst_71 : f32 to vector<16x16xf32>
    %224 = arith.mulf %222, %223 : vector<16x16xf32>
    %225 = arith.addf %224, %26 : vector<16x16xf32>
    %226 = math.exp %225 : vector<16x16xf32>
    %cst_72 = arith.constant dense<0.000000e+00> : vector<16xf32>
    %227 = vector.multi_reduction <add>, %226, %cst_72 [1] : vector<16x16xf32> to vector<16xf32>
    %228 = vector.shape_cast %227 : vector<16xf32> to vector<16x1xf32>
    %229 = tpu.reciprocal %228 {approx = true} : vector<16x1xf32> -> vector<16x1xf32>
    %230 = vector.broadcast %229 : vector<16x1xf32> to vector<16x16xf32>
    %231 = arith.mulf %226, %230 : vector<16x16xf32>
    %cst_73 = arith.constant dense<0.000000e+00> : vector<16x8xf32>
    %232 = tpu.matmul %231, %221, %cst_73 {dimension_numbers = #tpu.dot_dimension_numbers<[1], [0], [0], [1], [0, 0, 1, 1], [], []>} : vector<16x16xf32>, vector<16x8xf32>, vector<16x8xf32> -> vector<16x8xf32>
    %233 = tpu.concatenate %190, %204, %218, %232 in 1 : vector<16x8xf32>, vector<16x8xf32>, vector<16x8xf32>, vector<16x8xf32> -> vector<16x32xf32>
    %c1_74 = arith.constant 1 : index
    %c0_75 = arith.constant 0 : index
    %c0_76 = arith.constant 0 : index
    %234 = vector.load %arg4[%c1_74, %c0_75, %c0_76] : memref<2x32x32xf32, #tpu.memory_space<vmem>>, vector<1x32x32xf32>
    %235 = vector.shape_cast %234 : vector<1x32x32xf32> to vector<32x32xf32>
    %cst_77 = arith.constant dense<0.000000e+00> : vector<16x32xf32>
    %236 = tpu.matmul %233, %235, %cst_77 {dimension_numbers = #tpu.dot_dimension_numbers<[1], [0], [0], [1], [0, 0, 1, 1], [], []>} : vector<16x32xf32>, vector<32x32xf32>, vector<16x32xf32> -> vector<16x32xf32>
    %237 = vector.extract_strided_slice %0 {offsets = [13, 0], sizes = [1, 32], strides = [1, 1]} : vector<24x128xf32> to vector<1x32xf32>
    %238 = vector.broadcast %237 : vector<1x32xf32> to vector<16x32xf32>
    %239 = arith.addf %236, %238 : vector<16x32xf32>
    %240 = arith.addf %239, %170 : vector<16x32xf32>
    %241 = vector.extract_strided_slice %0 {offsets = [14, 0], sizes = [1, 32], strides = [1, 1]} : vector<24x128xf32> to vector<1x32xf32>
    %242 = vector.extract_strided_slice %0 {offsets = [15, 0], sizes = [1, 32], strides = [1, 1]} : vector<24x128xf32> to vector<1x32xf32>
    %cst_78 = arith.constant dense<0.000000e+00> : vector<16xf32>
    %243 = vector.multi_reduction <add>, %240, %cst_78 [1] : vector<16x32xf32> to vector<16xf32>
    %244 = vector.shape_cast %243 : vector<16xf32> to vector<16x1xf32>
    %cst_79 = arith.constant 3.200000e+01 : f32
    %245 = vector.broadcast %cst_79 : f32 to vector<16x1xf32>
    %246 = arith.divf %244, %245 : vector<16x1xf32>
    %247 = vector.broadcast %246 : vector<16x1xf32> to vector<16x32xf32>
    %248 = arith.subf %240, %247 : vector<16x32xf32>
    %249 = arith.mulf %248, %248 : vector<16x32xf32>
    %cst_80 = arith.constant dense<0.000000e+00> : vector<16xf32>
    %250 = vector.multi_reduction <add>, %249, %cst_80 [1] : vector<16x32xf32> to vector<16xf32>
    %251 = vector.shape_cast %250 : vector<16xf32> to vector<16x1xf32>
    %cst_81 = arith.constant 3.200000e+01 : f32
    %252 = vector.broadcast %cst_81 : f32 to vector<16x1xf32>
    %253 = arith.divf %251, %252 : vector<16x1xf32>
    %254 = vector.broadcast %246 : vector<16x1xf32> to vector<16x32xf32>
    %255 = arith.subf %240, %254 : vector<16x32xf32>
    %cst_82 = arith.constant 9.99999996E-13 : f32
    %256 = vector.broadcast %cst_82 : f32 to vector<16x1xf32>
    %257 = arith.addf %253, %256 : vector<16x1xf32>
    %258 = math.rsqrt %257 : vector<16x1xf32>
    %259 = vector.broadcast %258 : vector<16x1xf32> to vector<16x32xf32>
    %260 = arith.mulf %255, %259 : vector<16x32xf32>
    %261 = vector.broadcast %241 : vector<1x32xf32> to vector<16x32xf32>
    %262 = arith.mulf %260, %261 : vector<16x32xf32>
    %263 = vector.broadcast %242 : vector<1x32xf32> to vector<16x32xf32>
    %264 = arith.addf %262, %263 : vector<16x32xf32>
    %c1_83 = arith.constant 1 : index
    %c0_84 = arith.constant 0 : index
    %c0_85 = arith.constant 0 : index
    %265 = vector.load %arg5[%c1_83, %c0_84, %c0_85] : memref<2x32x64xf32, #tpu.memory_space<vmem>>, vector<1x32x64xf32>
    %266 = vector.shape_cast %265 : vector<1x32x64xf32> to vector<32x64xf32>
    %cst_86 = arith.constant dense<0.000000e+00> : vector<16x64xf32>
    %267 = tpu.matmul %264, %266, %cst_86 {dimension_numbers = #tpu.dot_dimension_numbers<[1], [0], [0], [1], [0, 0, 1, 1], [], []>} : vector<16x32xf32>, vector<32x64xf32>, vector<16x64xf32> -> vector<16x64xf32>
    %268 = vector.extract_strided_slice %0 {offsets = [16, 0], sizes = [1, 64], strides = [1, 1]} : vector<24x128xf32> to vector<1x64xf32>
    %269 = vector.broadcast %268 : vector<1x64xf32> to vector<16x64xf32>
    %270 = arith.addf %267, %269 : vector<16x64xf32>
    %271 = arith.mulf %270, %270 : vector<16x64xf32>
    %272 = arith.mulf %270, %271 : vector<16x64xf32>
    %cst_87 = arith.constant 4.471500e-02 : f32
    %273 = vector.broadcast %cst_87 : f32 to vector<16x64xf32>
    %274 = arith.mulf %273, %272 : vector<16x64xf32>
    %275 = arith.addf %270, %274 : vector<16x64xf32>
    %cst_88 = arith.constant 0.797884583 : f32
    %276 = vector.broadcast %cst_88 : f32 to vector<16x64xf32>
    %277 = arith.mulf %276, %275 : vector<16x64xf32>
    %278 = math.tanh %277 : vector<16x64xf32>
    %cst_89 = arith.constant 1.000000e+00 : f32
    %279 = vector.broadcast %cst_89 : f32 to vector<16x64xf32>
    %280 = arith.addf %279, %278 : vector<16x64xf32>
    %cst_90 = arith.constant 5.000000e-01 : f32
    %281 = vector.broadcast %cst_90 : f32 to vector<16x64xf32>
    %282 = arith.mulf %281, %280 : vector<16x64xf32>
    %283 = arith.mulf %270, %282 : vector<16x64xf32>
    %c1_91 = arith.constant 1 : index
    %c0_92 = arith.constant 0 : index
    %c0_93 = arith.constant 0 : index
    %284 = vector.load %arg6[%c1_91, %c0_92, %c0_93] : memref<2x64x32xf32, #tpu.memory_space<vmem>>, vector<1x64x32xf32>
    %285 = vector.shape_cast %284 : vector<1x64x32xf32> to vector<64x32xf32>
    %cst_94 = arith.constant dense<0.000000e+00> : vector<16x32xf32>
    %286 = tpu.matmul %283, %285, %cst_94 {dimension_numbers = #tpu.dot_dimension_numbers<[1], [0], [0], [1], [0, 0, 1, 1], [], []>} : vector<16x64xf32>, vector<64x32xf32>, vector<16x32xf32> -> vector<16x32xf32>
    %287 = vector.extract_strided_slice %0 {offsets = [17, 0], sizes = [1, 32], strides = [1, 1]} : vector<24x128xf32> to vector<1x32xf32>
    %288 = vector.broadcast %287 : vector<1x32xf32> to vector<16x32xf32>
    %289 = arith.addf %286, %288 : vector<16x32xf32>
    %290 = arith.addf %289, %264 : vector<16x32xf32>
    %291 = vector.extract_strided_slice %0 {offsets = [18, 0], sizes = [1, 32], strides = [1, 1]} : vector<24x128xf32> to vector<1x32xf32>
    %292 = vector.extract_strided_slice %0 {offsets = [19, 0], sizes = [1, 32], strides = [1, 1]} : vector<24x128xf32> to vector<1x32xf32>
    %cst_95 = arith.constant dense<0.000000e+00> : vector<16xf32>
    %293 = vector.multi_reduction <add>, %290, %cst_95 [1] : vector<16x32xf32> to vector<16xf32>
    %294 = vector.shape_cast %293 : vector<16xf32> to vector<16x1xf32>
    %cst_96 = arith.constant 3.200000e+01 : f32
    %295 = vector.broadcast %cst_96 : f32 to vector<16x1xf32>
    %296 = arith.divf %294, %295 : vector<16x1xf32>
    %297 = vector.broadcast %296 : vector<16x1xf32> to vector<16x32xf32>
    %298 = arith.subf %290, %297 : vector<16x32xf32>
    %299 = arith.mulf %298, %298 : vector<16x32xf32>
    %cst_97 = arith.constant dense<0.000000e+00> : vector<16xf32>
    %300 = vector.multi_reduction <add>, %299, %cst_97 [1] : vector<16x32xf32> to vector<16xf32>
    %301 = vector.shape_cast %300 : vector<16xf32> to vector<16x1xf32>
    %cst_98 = arith.constant 3.200000e+01 : f32
    %302 = vector.broadcast %cst_98 : f32 to vector<16x1xf32>
    %303 = arith.divf %301, %302 : vector<16x1xf32>
    %304 = vector.broadcast %296 : vector<16x1xf32> to vector<16x32xf32>
    %305 = arith.subf %290, %304 : vector<16x32xf32>
    %cst_99 = arith.constant 9.99999996E-13 : f32
    %306 = vector.broadcast %cst_99 : f32 to vector<16x1xf32>
    %307 = arith.addf %303, %306 : vector<16x1xf32>
    %308 = math.rsqrt %307 : vector<16x1xf32>
    %309 = vector.broadcast %308 : vector<16x1xf32> to vector<16x32xf32>
    %310 = arith.mulf %305, %309 : vector<16x32xf32>
    %311 = vector.broadcast %291 : vector<1x32xf32> to vector<16x32xf32>
    %312 = arith.mulf %310, %311 : vector<16x32xf32>
    %313 = vector.broadcast %292 : vector<1x32xf32> to vector<16x32xf32>
    %314 = arith.addf %312, %313 : vector<16x32xf32>
    %315 = vector.extract_strided_slice %314 {offsets = [0, 0], sizes = [1, 32], strides = [1, 1]} : vector<16x32xf32> to vector<1x32xf32>
    %316 = vector.extract_strided_slice %314 {offsets = [8, 0], sizes = [1, 32], strides = [1, 1]} : vector<16x32xf32> to vector<1x32xf32>
    %317 = tpu.concatenate %315, %316 in 0 : vector<1x32xf32>, vector<1x32xf32> -> vector<2x32xf32>
    %c0_100 = arith.constant 0 : index
    %c0_101 = arith.constant 0 : index
    %318 = vector.load %arg7[%c0_100, %c0_101] : memref<32x32xf32, #tpu.memory_space<vmem>>, vector<32x32xf32>
    %cst_102 = arith.constant dense<0.000000e+00> : vector<2x32xf32>
    %319 = tpu.matmul %317, %318, %cst_102 {dimension_numbers = #tpu.dot_dimension_numbers<[1], [0], [0], [1], [0, 0, 1, 1], [], []>} : vector<2x32xf32>, vector<32x32xf32>, vector<2x32xf32> -> vector<2x32xf32>
    %320 = vector.extract_strided_slice %0 {offsets = [2, 0], sizes = [1, 32], strides = [1, 1]} : vector<24x128xf32> to vector<1x32xf32>
    %321 = vector.broadcast %320 : vector<1x32xf32> to vector<2x32xf32>
    %322 = arith.addf %319, %321 : vector<2x32xf32>
    %323 = math.tanh %322 : vector<2x32xf32>
    %c0_103 = arith.constant 0 : index
    %c0_104 = arith.constant 0 : index
    %324 = vector.load %arg8[%c0_103, %c0_104] : memref<32x32xf32, #tpu.memory_space<vmem>>, vector<32x32xf32>
    %cst_105 = arith.constant dense<0.000000e+00> : vector<2x32xf32>
    %325 = tpu.matmul %323, %324, %cst_105 {dimension_numbers = #tpu.dot_dimension_numbers<[1], [0], [0], [1], [0, 0, 1, 1], [], []>} : vector<2x32xf32>, vector<32x32xf32>, vector<2x32xf32> -> vector<2x32xf32>
    %326 = vector.extract_strided_slice %0 {offsets = [3, 0], sizes = [1, 32], strides = [1, 1]} : vector<24x128xf32> to vector<1x32xf32>
    %327 = vector.broadcast %326 : vector<1x32xf32> to vector<2x32xf32>
    %328 = arith.addf %325, %327 : vector<2x32xf32>
    %329 = arith.mulf %323, %323 : vector<2x32xf32>
    %cst_106 = arith.constant dense<0.000000e+00> : vector<2xf32>
    %330 = vector.multi_reduction <add>, %329, %cst_106 [1] : vector<2x32xf32> to vector<2xf32>
    %331 = vector.shape_cast %330 : vector<2xf32> to vector<2x1xf32>
    %cst_107 = arith.constant 1.000000e-24 : f32
    %332 = vector.broadcast %cst_107 : f32 to vector<2x1xf32>
    %333 = arith.maximumf %331, %332 : vector<2x1xf32>
    %334 = math.rsqrt %333 : vector<2x1xf32>
    %335 = vector.broadcast %334 : vector<2x1xf32> to vector<2x32xf32>
    %336 = arith.mulf %323, %335 : vector<2x32xf32>
    %cst_108 = arith.constant 0.000000e+00 : f32
    %337 = vector.broadcast %cst_108 : f32 to vector<2x64xf32>
    %338 = tpu.concatenate %328, %336, %337 in 1 : vector<2x32xf32>, vector<2x32xf32>, vector<2x64xf32> -> vector<2x128xf32>
    %c0_109 = arith.constant 0 : index
    %c0_110 = arith.constant 0 : index
    %339 = vector.load %arg9[%c0_109, %c0_110] : memref<2x128xf32, #tpu.memory_space<vmem>>, vector<2x128xf32>
    tpu.vector_store %arg9[%c0_109, %c0_110], %338 {strides = array<i32>} : memref<2x128xf32, #tpu.memory_space<vmem>>, vector<2x128xf32>,
    return
  }
}

</mosaic_0001>

<bundles_post_ra>
// kernel: net_forward.1
= control target key start
LH: loop header
LB: loop body
LE: loop exit
PB: predicated region body
PF: predicated region fallthrough
CT: control target
= control target key end

     0   :  { %vm37_vm0 = vcmask 261120   ;;  %v65_v22 = vlaneseq  ;;  %vm174_vm1 = vcmask 64512   ;;  %s3637_s22 = smov 88   ;;  %s3638_s23 = smov 96   ;;  %vm266_vm3 = vcmask 130048   ;;  %s4238_s0 = inlined_call_operand.vmem [shape: f32[16,32], index: 0, kind: input, shape index: {}]   ;;  %s4239_s3 = inlined_call_operand.vmem [shape: f32[2,32,96], index: 3, kind: input, shape index: {}]   ;;  %s4240_s2 = inlined_call_operand.vmem [shape: f32[24,128], index: 2, kind: input, shape index: {}]   ;;  %s4241_s1 = inlined_call_operand.vmem [shape: f32[16,16], index: 1, kind: input, shape index: {}]   ;;  %s4242_s4 = inlined_call_operand.vmem [shape: f32[2,32,32], index: 4, kind: input, shape index: {}]   ;;  %s4243_s5 = inlined_call_operand.vmem [shape: f32[2,32,64], index: 5, kind: input, shape index: {}]   ;;  %s4244_s6 = inlined_call_operand.vmem [shape: f32[2,64,32], index: 6, kind: input, shape index: {}]   ;;  %s4245_s7 = inlined_call_operand.vmem [shape: f32[32,32], index: 7, kind: input, shape index: {}]   ;;  %s4246_s8 = inlined_call_operand.vmem [shape: f32[32,32], index: 8, kind: input, shape index: {}]   ;;  %s4247_s9 = inlined_call_operand.vmem [shape: f32[2,128], index: 9, kind: output, shape index: {}]  }
   0x1   :  { %v35_v0 = vld [vmem:[%s4238_s0] sm:$0xff]  ;;  %v36_v1 = vld [vmem:[%s4238_s0 + $0x8] sm:$0xff]  ;;  %v81_v16 = vld [vmem:[%s4239_s3 + $0x10] sm:$0xff]  ;;  %s3639_s24 = smov 120   ;;  %s3640_s29 = smov 56   ;;  %vm980_vm4 = vcmask 195584  }
   0x2   :  { %v38_v2 = vsel %vm37_vm0, %v35_v0, 0.0  ;;  %v41_v3 = vsel %vm37_vm0, %v36_v1, 0.0  ;;  %v79_v14 = vld [vmem:[%s4239_s3] sm:$0xff]  ;;  %v80_v15 = vld [vmem:[%s4239_s3 + $0x8] sm:$0xff]  ;;  %v82_v18 = vld [vmem:[%s4239_s3 + $0x18] sm:$0xff]  ;;  %v3727_v26 = vshrl.u32 %v65_v22, 7 }
   0x3   :  { %39 = vadd.xlane.f32.xlu0 %v38_v2  ;;  %v3268_v17 = vpack.c.bf16 %v80_v15, %v79_v14  ;;  %v3272_v19 = vpack.c.bf16 %v82_v18, %v81_v16  ;;  %v3735_v29 = vld [vmem:[%s4240_s2] sm:$0xff]  ;;  %vm3776_vm2 = vmpackc.low %vm174_vm1, %vm174_vm1  ;;  %v3795_v59 = vld [vmem:[%s4241_s1 + $0x8] sm:$0xff]  ;;  %s3641_s30 = smov 80   ;;  %s3642_s10 = smov 112   ;;  %vm1231_vm5 = vcmask 523264   ;;  %vm3652_vm6 = vmmov 0  }
   0x4   :  { %v3730_v28 = vsub.s32 0, %v3727_v26  ;;  %v3738_v30 = vsub.s32 1, %v3727_v26  ;;  %v85_v41 = vsub.s32 4, %v3727_v26  ;;  %v3800_v62 = vld [vmem:[%s4241_s1] sm:$0xff]  ;;  %s3643_s11 = smov 72   ;;  %s3644_s12 = smov 64  }
   0x5   :  { %3269 = vmatprep.subr.bf16.mxu0 %v3268_v17  ;;  %s3645_s0 = smov 104   ;;  %s3646_s13 = smov 48   ;;  %vm2630_vm7 = vcmask 1040384   ;;  %vm2796_vm8 = vcmask 254976  }
   0x6   :  { %3271 = vmatpush3.bf16.msra.mxu0 %v3268_v17  ;;  %v68_v31 = vrot.slane %v3735_v29, %v3730_v28  ;;  %v74_v34 = vrot.slane %v3735_v29, %v3738_v30  ;;  %v86_v42 = vrot.slane %v3735_v29, %v85_v41  ;;  %s3647_s14 = smov 8   ;;  %s3648_s15 = smov 40  }
   0x7   :  { %42 = vadd.xlane.f32.xlu0 %v41_v3  ;;  %3273 = vmatprep.subr.bf16.mxu0 %v3272_v19  ;;  %s3649_s16 = smov 16   ;;  %s3650_s28 = smov 24  }
   0xa   :  { %3275 = vmatpush3.bf16.msra.mxu0 %v3272_v19 }
  0x90   :  { %v40_v4 = vpop.xlane.xlu0 %39 }
  0x91   :  { %v45_v5 = vmul.f32 0.03125, %v40_v4 }
  0x93   :  { %v47_v6 = vsub.f32 %v35_v0, %v45_v5 }
  0x94   :  { %v43_v7 = vpop.xlane.xlu0 %42 }
  0x95   :  { %v46_v8 = vmul.f32 0.03125, %v43_v7  ;;  %v49_v9 = vmul.f32 %v47_v6, %v47_v6 }
  0x97   :  { %v48_v10 = vsub.f32 %v36_v1, %v46_v8  ;;  %v51_v11 = vsel %vm37_vm0, %v49_v9, 0.0 }
  0x98   :  { %52 = vadd.xlane.f32.xlu1 %v51_v11 }
  0x99   :  { %v50_v12 = vmul.f32 %v48_v10, %v48_v10 }
  0x9b   :  { %v54_v13 = vsel %vm37_vm0, %v50_v12, 0.0 }
  0x9c   :  { %55 = vadd.xlane.f32.xlu1 %v54_v13 }
 0x125   :  { %v53_v20 = vpop.xlane.xlu1 %52 }
 0x126   :  { %v57_v21 = vmul.f32 0.03125, %v53_v20 }
 0x128   :  { %v59_v23 = vadd.f32 1e-12, %v57_v21 }
 0x129   :  { %v56_v24 = vpop.xlane.xlu1 %55 }
 0x12a   :  { %3538 = vrsqrt.f32 %v59_v23  ;;  %v58_v25 = vmul.f32 0.03125, %v56_v24 }
 0x12c   :  { %v60_v27 = vadd.f32 1e-12, %v58_v25 }
 0x12e   :  { %3540 = vrsqrt.f32 %v60_v27 }
 0x134   :  { %v3539_v32 = vpop.eup %3538 }
 0x135   :  { %v63_v33 = vmul.f32 %v3539_v32, %v47_v6 }
 0x137   :  { %v69_v35 = vmul.f32 %v68_v31, %v63_v33 }
 0x138   :  { %v3541_v36 = vpop.eup %3540 }
 0x139   :  { %v64_v37 = vmul.f32 %v3541_v36, %v48_v10  ;;  %v3744_v38 = vadd.f32 %v74_v34, %v69_v35 }
 0x13b   :  { %v70_v39 = vmul.f32 %v68_v31, %v64_v37  ;;  %3038 = vmatprep.mubr.msk.f32.mxu0 %vm37_vm0, %v3744_v38 }
 0x13d   :  { %v3748_v40 = vadd.f32 %v74_v34, %v70_v39 }
 0x13f   :  { %3039 = vmatmul.mubr.msk.f32.vlgmr.msra.gmra.mrb[0].mxu0 %vm37_vm0, %v3748_v40 }
 0x212   :  { %v3040_v43 = vpop.f32.mrb[0].mxu0 }
 0x213   :  { %v3756_v44 = vadd.f32 %v3040_v43, %v86_v42  ;;  %v159_v45 = vpop.f32.mrb[1].mxu0 }
 0x214   :  { %v3758_v46 = vadd.f32 %v159_v45, %v86_v42 }
 0x216   :  { %3045 = vmatprep.mubr.msk.f32.mxu1 %vm174_vm1, %v3758_v46  ;;  %v3764_v47 = vpack.i.bf16 %v3756_v44, %v3758_v46 }
 0x218   :  { %3464 = vrot.lane.b32.xlu1 %v3764_v47, %s3637_s22  ;;  %3459 = vrot.lane.b32.xlu0 %v3764_v47, %s3638_s23 }
 0x21c   :  { %364 = vrot.lane.b32.xlu1 %v3758_v46, %s3639_s24 }
 0x220   :  { %366 = vrot.lane.b32.xlu1 %v3756_v44, %s3639_s24 }
 0x28a   :  { %v3465_v48 = vpop.permute.xlu1 %3464  ;;  %v3460_v49 = vpop.permute.xlu0 %3459 }
 0x28b   :  { %v3467_v50 = vunpack.i.h.bf16 %v3465_v48  ;;  %v3466_v51 = vunpack.i.l.bf16 %v3465_v48  ;;  %v3462_v52 = vunpack.i.h.bf16 %v3460_v49  ;;  %v3461_v53 = vunpack.i.l.bf16 %v3460_v49 }
 0x28d   :  { %v3276_v55 = vpack.c.bf16 %v3462_v52, %v3461_v53  ;;  %v3286_v56 = vpack.c.bf16 %v3467_v50, %v3466_v51 }
 0x28e   :  { %v365_v57 = vpop.permute.xlu1 %364 }
 0x28f   :  { %3278 = vmatprep.subr.msk.bf16.mxu1 %vm3776_vm2, %v3276_v55 }
 0x290   :  { %3281 = vmatpush3.bf16.xpose.msk.msra.mxu1 %vm3776_vm2, %v3276_v55 }
 0x291   :  { %3288 = vmatprep.subr.msk.bf16.mxu1 %vm3776_vm2, %v3286_v56 }
 0x292   :  { %v367_v58 = vpop.permute.xlu1 %366 }
 0x297   :  { %3046 = vmatmul.mubr.msk.f32.vlgmr.msra.gmra.mrb[0].mxu1 %vm174_vm1, %v3756_v44 }
 0x298   :  { %3291 = vmatpush3.bf16.xpose.msk.msra.mxu1 %vm3776_vm2, %v3286_v56  ;;  %3059 = vmatprep.mubr.msk.f32.mxu1 %vm174_vm1, %v365_v57 }
 0x29f   :  { %3060 = vmatmul.mubr.msk.f32.vlgmr.msra.gmra.mrb[2].mxu1 %vm174_vm1, %v367_v58 }
 0x36a   :  { %v3047_v60 = vpop.f32.mrb[0].mxu1 }
 0x36b   :  { %v259_v61 = vmul.f32 0.35355338, %v3047_v60  ;;  %v249_v63 = vpop.f32.mrb[1].mxu1 }
 0x36c   :  { %v258_v0 = vmul.f32 0.35355338, %v249_v63 }
 0x36d   :  { %v261_v1 = vadd.f32 %v259_v61, %v3795_v59 }
 0x36e   :  { %v260_v2 = vadd.f32 %v258_v0, %v3800_v62 }
 0x36f   :  { %v264_v3 = vmul.f32 1.442695, %v261_v1 }
 0x370   :  { %v262_v4 = vmul.f32 1.442695, %v260_v2 }
 0x371   :  { %3542 = vpow2.f32 %v264_v3 }
 0x372   :  { %3544 = vpow2.f32 %v262_v4  ;;  %v3061_v5 = vpop.f32.mrb[2].mxu1 }
 0x373   :  { %v456_v6 = vmul.f32 0.35355338, %v3061_v5  ;;  %v446_v7 = vpop.f32.mrb[3].mxu1 }
 0x374   :  { %v455_v8 = vmul.f32 0.35355338, %v446_v7 }
 0x375   :  { %v458_v9 = vadd.f32 %v456_v6, %v3795_v59 }
 0x376   :  { %v457_v10 = vadd.f32 %v455_v8, %v3800_v62 }
 0x377   :  { %v461_v11 = vmul.f32 1.442695, %v458_v9 }
 0x378   :  { %v459_v12 = vmul.f32 1.442695, %v457_v10 }
 0x379   :  { %3546 = vpow2.f32 %v461_v11 }
 0x37a   :  { %3548 = vpow2.f32 %v459_v12 }
 0x37b   :  { %v3543_v13 = vpop.eup %3542 }
 0x37c   :  { %v3545_v14 = vpop.eup %3544  ;;  %v270_v15 = vsel %vm266_vm3, %v3543_v13, 0.0 }
 0x37d   :  { %271 = vadd.xlane.f32.xlu1 %v270_v15  ;;  %v267_v16 = vsel %vm266_vm3, %v3545_v14, 0.0 }
 0x37e   :  { %268 = vadd.xlane.f32.xlu0 %v267_v16 }
 0x383   :  { %v3547_v17 = vpop.eup %3546 }
 0x384   :  { %v466_v18 = vsel %vm266_vm3, %v3547_v17, 0.0  ;;  %v3549_v19 = vpop.eup %3548 }
 0x385   :  { %467 = vadd.xlane.f32.xlu0 %v466_v18  ;;  %v463_v20 = vsel %vm266_vm3, %v3549_v19, 0.0 }
 0x389   :  { %464 = vadd.xlane.f32.xlu0 %v463_v20 }
 0x38e   :  { %3474 = vrot.lane.b32.xlu1 %v3764_v47, %s3640_s29 }
 0x392   :  { %3479 = vrot.lane.b32.xlu1 %v3764_v47, %s3641_s30 }
 0x396   :  { %560 = vrot.lane.b32.xlu1 %v3758_v46, %s3642_s10 }
 0x39a   :  { %3489 = vrot.lane.b32.xlu1 %v3764_v47, %s3643_s11 }
 0x39f   :  { %3469 = vrot.lane.b32.xlu0 %v3764_v47, %s3644_s12 }
 0x3a3   :  { %562 = vrot.lane.b32.xlu0 %v3756_v44, %s3642_s10 }
 0x40a   :  { %v272_v22 = vpop.xlane.xlu1 %271 }
 0x40b   :  { %v269_v21 = vpop.xlane.xlu0 %268 }
 0x40c   :  { %3550 = vrcp.f32 %v269_v21 }
 0x40d   :  { %3552 = vrcp.f32 %v272_v22 }
 0x40e   :  { %v3475_v25 = vpop.permute.xlu1 %3474 }
 0x40f   :  { %v3477_v33 = vunpack.i.h.bf16 %v3475_v25  ;;  %v3476_v34 = vunpack.i.l.bf16 %v3475_v25 }
 0x411   :  { %v3292_v43 = vpack.c.bf16 %v3477_v33, %v3476_v34 }
 0x412   :  { %v468_v23 = vpop.xlane.xlu0 %467  ;;  %v3480_v37 = vpop.permute.xlu1 %3479 }
 0x413   :  { %v3482_v45 = vunpack.i.h.bf16 %v3480_v37  ;;  %v3481_v48 = vunpack.i.l.bf16 %v3480_v37 }
 0x415   :  { %v3296_v53 = vpack.c.bf16 %v3482_v45, %v3481_v48 }
 0x416   :  { %v3551_v24 = vpop.eup %3550  ;;  %v465_v27 = vpop.xlane.xlu0 %464 }
 0x417   :  { %3554 = vrcp.f32 %v465_v27  ;;  %v275_v31 = vmul.f32 %v3551_v24, %v3545_v14  ;;  %v3553_v42 = vpop.eup %3552  ;;  %v561_v56 = vpop.permute.xlu1 %560 }
 0x418   :  { %3556 = vrcp.f32 %v468_v23  ;;  %v276_v50 = vmul.f32 %v3553_v42, %v3543_v13 }
 0x419   :  { %3052 = vmatprep.mubr.msk.f32.mxu0 %vm266_vm3, %v275_v31 }
 0x41a   :  { %v3470_v32 = vpop.permute.xlu0 %3469 }
 0x41b   :  { %v3472_v35 = vunpack.i.h.bf16 %v3470_v32  ;;  %v3471_v36 = vunpack.i.l.bf16 %v3470_v32  ;;  %v3490_v12 = vpop.permute.xlu1 %3489 }
 0x41c   :  { %v3492_v16 = vunpack.i.h.bf16 %v3490_v12 }
 0x41d   :  { %v3282_v39 = vpack.c.bf16 %v3472_v35, %v3471_v36 }
 0x41e   :  { %v563_v57 = vpop.permute.xlu0 %562 }
 0x41f   :  { %3283 = vmatprep.subr.bf16.mxu0 %v3282_v39 }
 0x420   :  { %3285 = vmatpush3.bf16.msra.mxu0 %v3282_v39 }
 0x421   :  { %v3555_v49 = vpop.eup %3554  ;;  %3293 = vmatprep.subr.bf16.mxu0 %v3292_v43 }
 0x422   :  { %v3557_v51 = vpop.eup %3556  ;;  %v471_v52 = vmul.f32 %v3555_v49, %v3549_v19 }
 0x423   :  { %3053 = vmatmul.mubr.msk.f32.vlgmr.msra.gmra.mrb[2].mxu0 %vm266_vm3, %v276_v50  ;;  %v472_v55 = vmul.f32 %v3557_v51, %v3547_v17  ;;  %v3491_v17 = vunpack.i.l.bf16 %v3490_v12 }
 0x424   :  { %3295 = vmatpush3.bf16.msra.mxu0 %v3292_v43  ;;  %3066 = vmatprep.mubr.msk.f32.mxu0 %vm266_vm3, %v471_v52 }
 0x425   :  { %3298 = vmatprep.subr.msk.bf16.mxu0 %vm3776_vm2, %v3296_v53  ;;  %v3306_v21 = vpack.c.bf16 %v3492_v16, %v3491_v17 }
 0x427   :  { %3067 = vmatmul.mubr.msk.f32.vlgmr.msra.gmra.mrb[4].mxu0 %vm266_vm3, %v472_v55 }
 0x428   :  { %3073 = vmatprep.mubr.msk.f32.mxu0 %vm174_vm1, %v561_v56 }
 0x42d   :  { %3301 = vmatpush3.bf16.xpose.msk.msra.mxu0 %vm3776_vm2, %v3296_v53 }
 0x434   :  { %3074 = vmatmul.mubr.msk.f32.vlgmr.msra.gmra.mrb[6].mxu0 %vm174_vm1, %v563_v57 }
 0x4f6   :  { %v3832_v58 = vpop.f32.mrb[2].mxu0 }
 0x4f7   :  { %v3834_v60 = vpop.f32.mrb[3].mxu0 }
 0x4fa   :  { %v3836_v61 = vpop.f32.mrb[4].mxu0 }
 0x4fb   :  { %v3838_v63 = vpop.f32.mrb[5].mxu0 }
 0x507   :  { %v3075_v0 = vpop.f32.mrb[6].mxu0 }
 0x508   :  { %v652_v1 = vmul.f32 0.35355338, %v3075_v0  ;;  %v642_v2 = vpop.f32.mrb[7].mxu0 }
 0x509   :  { %v651_v3 = vmul.f32 0.35355338, %v642_v2  ;;  %v985_v2 = vld [vmem:[%s4242_s4 + $0x10] sm:$0xff] }
 0x50a   :  { %v654_v4 = vadd.f32 %v652_v1, %v3795_v59  ;;  %v984_v1 = vld [vmem:[%s4242_s4 + $0x8] sm:$0xff] }
 0x50b   :  { %v653_v5 = vadd.f32 %v651_v3, %v3800_v62 }
 0x50c   :  { %v657_v6 = vmul.f32 1.442695, %v654_v4  ;;  %v986_v4 = vld [vmem:[%s4242_s4 + $0x18] sm:$0xff] }
 0x50d   :  { %v655_v7 = vmul.f32 1.442695, %v653_v5  ;;  %v3320_v5 = vpack.c.bf16 %v986_v4, %v985_v2 }
 0x50e   :  { %3558 = vpow2.f32 %v657_v6 }
 0x50f   :  { %3560 = vpow2.f32 %v655_v7 }
 0x518   :  { %v3559_v8 = vpop.eup %3558 }
 0x519   :  { %v3561_v9 = vpop.eup %3560  ;;  %v662_v10 = vsel %vm266_vm3, %v3559_v8, 0.0 }
 0x51a   :  { %663 = vadd.xlane.f32.xlu0 %v662_v10  ;;  %v659_v11 = vsel %vm266_vm3, %v3561_v9, 0.0 }
 0x51b   :  { %660 = vadd.xlane.f32.xlu1 %v659_v11 }
 0x52c   :  { %756 = vrot.lane.b32.xlu1 %v3758_v46, %s3645_s0 }
 0x530   :  { %3484 = vrot.lane.b32.xlu0 %v3764_v47, %s3646_s13 }
 0x534   :  { %758 = vrot.lane.b32.xlu0 %v3756_v44, %s3645_s0 }
 0x5a7   :  { %v664_v13 = vpop.xlane.xlu0 %663 }
 0x5a8   :  { %3562 = vrcp.f32 %v664_v13  ;;  %v661_v14 = vpop.xlane.xlu1 %660 }
 0x5a9   :  { %3564 = vrcp.f32 %v661_v14 }
 0x5ab   :  { %v3485_v15 = vpop.permute.xlu0 %3484 }
 0x5ac   :  { %v3487_v18 = vunpack.i.h.bf16 %v3485_v15  ;;  %v3486_v19 = vunpack.i.l.bf16 %v3485_v15  ;;  %v757_v24 = vpop.permute.xlu1 %756 }
 0x5ae   :  { %v3302_v20 = vpack.c.bf16 %v3487_v18, %v3486_v19 }
 0x5af   :  { %v759_v25 = vpop.permute.xlu0 %758 }
 0x5b0   :  { %3303 = vmatprep.subr.bf16.mxu1 %v3302_v20 }
 0x5b1   :  { %3305 = vmatpush3.bf16.msra.mxu1 %v3302_v20  ;;  %v989_v20 = vsub.s32 5, %v3727_v26 }
 0x5b2   :  { %v3563_v46 = vpop.eup %3562  ;;  %3308 = vmatprep.subr.msk.bf16.mxu1 %vm3776_vm2, %v3306_v21 }
 0x5b3   :  { %v3565_v22 = vpop.eup %3564  ;;  %v668_v23 = vmul.f32 %v3563_v46, %v3559_v8 }
 0x5b4   :  { %v667_v44 = vmul.f32 %v3565_v22, %v3561_v9 }
 0x5b6   :  { %3080 = vmatprep.mubr.msk.f32.mxu1 %vm266_vm3, %v667_v44 }
 0x5b7   :  { %3081 = vmatmul.mubr.msk.f32.vlgmr.msra.gmra.mrb[4].mxu1 %vm266_vm3, %v668_v23 }
 0x5b8   :  { %3087 = vmatprep.mubr.msk.f32.mxu1 %vm174_vm1, %v757_v24 }
 0x5ba   :  { %3311 = vmatpush3.bf16.xpose.msk.msra.mxu1 %vm3776_vm2, %v3306_v21 }
 0x5c1   :  { %3088 = vmatmul.mubr.msk.f32.vlgmr.msra.gmra.mrb[6].mxu1 %vm174_vm1, %v759_v25 }
 0x68a   :  { %v3082_v27 = vpop.f32.mrb[4].mxu1 }
 0x68b   :  { %v747_v31 = vpop.f32.mrb[5].mxu1 }
 0x694   :  { %v3089_v32 = vpop.f32.mrb[6].mxu1 }
 0x695   :  { %v848_v33 = vmul.f32 0.35355338, %v3089_v32  ;;  %v838_v34 = vpop.f32.mrb[7].mxu1 }
 0x696   :  { %v847_v35 = vmul.f32 0.35355338, %v838_v34 }
 0x697   :  { %v850_v36 = vadd.f32 %v848_v33, %v3795_v59 }
 0x698   :  { %v849_v37 = vadd.f32 %v847_v35, %v3800_v62 }
 0x699   :  { %v853_v39 = vmul.f32 1.442695, %v850_v36 }
 0x69a   :  { %v851_v42 = vmul.f32 1.442695, %v849_v37 }
 0x69b   :  { %3566 = vpow2.f32 %v853_v39 }
 0x69c   :  { %3568 = vpow2.f32 %v851_v42  ;;  %v1113_v42 = vld [vmem:[%s4243_s5 + $0x8] sm:$0xff] }
 0x6a5   :  { %v3567_v43 = vpop.eup %3566 }
 0x6a6   :  { %v3569_v45 = vpop.eup %3568  ;;  %v858_v48 = vsel %vm266_vm3, %v3567_v43, 0.0 }
 0x6a7   :  { %859 = vadd.xlane.f32.xlu0 %v858_v48  ;;  %v855_v49 = vsel %vm266_vm3, %v3569_v45, 0.0  ;;  %v1115_v48 = vld [vmem:[%s4243_s5 + $0x18] sm:$0xff] }
 0x6a8   :  { %856 = vadd.xlane.f32.xlu1 %v855_v49 }
 0x6b9   :  { %954 = vrot.lane.b32.xlu1 %v3838_v63, %s3647_s14 }
 0x6bd   :  { %3494 = vrot.lane.b32.xlu0 %v3764_v47, %s3648_s15  ;;  %956 = vrot.lane.b32.xlu1 %v3836_v61, %s3647_s14  ;;  %v983_v61 = vld [vmem:[%s4242_s4] sm:$0xff] }
 0x6be   :  { %v3316_v3 = vpack.c.bf16 %v984_v1, %v983_v61 }
 0x6c1   :  { %962 = vrot.lane.b32.xlu0 %v747_v31, %s3649_s16  ;;  %964 = vrot.lane.b32.xlu1 %v3082_v27, %s3649_s16 }
 0x734   :  { %v860_v50 = vpop.xlane.xlu0 %859 }
 0x735   :  { %3570 = vrcp.f32 %v860_v50  ;;  %v857_v51 = vpop.xlane.xlu1 %856 }
 0x736   :  { %3572 = vrcp.f32 %v857_v51 }
 0x738   :  { %v3495_v52 = vpop.permute.xlu0 %3494 }
 0x739   :  { %v3497_v53 = vunpack.i.h.bf16 %v3495_v52  ;;  %v3496_v55 = vunpack.i.l.bf16 %v3495_v52  ;;  %v955_v8 = vpop.permute.xlu1 %954 }
 0x73a   :  { %v976_v12 = vsel %vm174_vm1, %v3834_v60, %v955_v8  ;;  %v990_v60 = vrot.slane %v3735_v29, %v989_v20  ;;  %v1219_v8 = vld [vmem:[%s4244_s6] sm:$0xff] }
 0x73b   :  { %v3312_v56 = vpack.c.bf16 %v3497_v53, %v3496_v55 }
 0x73c   :  { %v963_v11 = vpop.permute.xlu0 %962 }
 0x73d   :  { %3313 = vmatprep.subr.bf16.mxu0 %v3312_v56  ;;  %v957_v9 = vpop.permute.xlu1 %956  ;;  %v978_v14 = vsel %vm266_vm3, %v976_v12, %v963_v11  ;;  %v1222_v11 = vld [vmem:[%s4244_s6 + $0x18] sm:$0xff] }
 0x73e   :  { %3315 = vmatpush3.bf16.msra.mxu0 %v3312_v56  ;;  %v977_v15 = vsel %vm174_vm1, %v3832_v58, %v957_v9  ;;  %v1220_v9 = vld [vmem:[%s4244_s6 + $0x8] sm:$0xff] }
 0x73f   :  { %v3571_v57 = vpop.eup %3570  ;;  %3317 = vmatprep.subr.bf16.mxu0 %v3316_v3 }
 0x740   :  { %v3573_v47 = vpop.eup %3572  ;;  %v864_v0 = vmul.f32 %v3571_v57, %v3567_v43  ;;  %v1102_v57 = vsub.s32 6, %v3727_v26 }
 0x741   :  { %v863_v63 = vmul.f32 %v3573_v47, %v3569_v45  ;;  %v965_v10 = vpop.permute.xlu1 %964  ;;  %v1114_v45 = vld [vmem:[%s4243_s5 + $0x10] sm:$0xff]  ;;  %v1108_v47 = vsub.s32 7, %v3727_v26 }
 0x742   :  { %v979_v17 = vsel %vm266_vm3, %v977_v15, %v965_v10  ;;  %v3328_v49 = vpack.c.bf16 %v1115_v48, %v1114_v45  ;;  %v3332_v10 = vpack.c.bf16 %v1220_v9, %v1219_v8 }
 0x743   :  { %3094 = vmatprep.mubr.msk.f32.mxu0 %vm266_vm3, %v863_v63  ;;  %v1103_v63 = vrot.slane %v3735_v29, %v1102_v57  ;;  %v1109_v1 = vrot.slane %v3735_v29, %v1108_v47  ;;  %v1221_v29 = vld [vmem:[%s4244_s6 + $0x10] sm:$0xff] }
 0x744   :  { %3095 = vmatmul.mubr.msk.f32.vlgmr.msra.gmra.mrb[8].mxu0 %vm266_vm3, %v864_v0  ;;  %v3336_v12 = vpack.c.bf16 %v1222_v11, %v1221_v29  ;;  %v2848_v11 = vld [vmem:[%s4239_s3 + $0x30] sm:$0xff] }
 0x745   :  { %3319 = vmatpush3.bf16.msra.mxu0 %v3316_v3 }
 0x746   :  { %3321 = vmatprep.subr.bf16.mxu0 %v3320_v5 }
 0x749   :  { %3323 = vmatpush3.bf16.msra.mxu0 %v3320_v5 }
 0x74a   :  { %3333 = vmatprep.subr.bf16.mxu0 %v3332_v10 }
 0x817   :  { %v3096_v6 = vpop.f32.mrb[8].mxu0 }
 0x818   :  { %972 = vrot.lane.b32.xlu1 %v3096_v6, %s3650_s28  ;;  %v943_v7 = vpop.f32.mrb[9].mxu0 }
 0x819   :  { %970 = vrot.lane.b32.xlu0 %v943_v7, %s3650_s28 }
 0x88a   :  { %v973_v13 = vpop.permute.xlu1 %972 }
 0x88b   :  { %v971_v16 = vpop.permute.xlu0 %970  ;;  %v982_v19 = vsel %vm980_vm4, %v979_v17, %v973_v13  ;;  %v1223_v13 = vld [vmem:[%s4244_s6 + $0x20] sm:$0xff]  ;;  %v1226_v17 = vld [vmem:[%s4244_s6 + $0x38] sm:$0xff] }
 0x88c   :  { %v981_v18 = vsel %vm980_vm4, %v978_v14, %v971_v16  ;;  %v1224_v14 = vld [vmem:[%s4244_s6 + $0x28] sm:$0xff]  ;;  %v1225_v16 = vld [vmem:[%s4244_s6 + $0x30] sm:$0xff] }
 0x88d   :  { %3105 = vmatprep.mubr.msk.f32.mxu0 %vm37_vm0, %v981_v18  ;;  %v3340_v15 = vpack.c.bf16 %v1224_v14, %v1223_v13  ;;  %v3344_v18 = vpack.c.bf16 %v1226_v17, %v1225_v16 }
 0x88e   :  { %3106 = vmatmul.mubr.msk.f32.vlgmr.msra.gmra.mrb[10].mxu0 %vm37_vm0, %v982_v19  ;;  %v3955_v19 = vld [vmem:[%s4240_s2 + $0x8] sm:$0xff] }
 0x88f   :  { %3335 = vmatpush3.bf16.msra.mxu0 %v3332_v10  ;;  %v1230_v48 = vrot.slane %v3955_v19, %v3738_v30  ;;  %v2847_v10 = vld [vmem:[%s4239_s3 + $0x28] sm:$0xff] }
 0x890   :  { %3337 = vmatprep.subr.bf16.mxu0 %v3336_v12 }
 0x893   :  { %3339 = vmatpush3.bf16.msra.mxu0 %v3336_v12  ;;  %v2849_v12 = vld [vmem:[%s4239_s3 + $0x38] sm:$0xff] }
 0x894   :  { %3341 = vmatprep.subr.bf16.mxu0 %v3340_v15  ;;  %v3352_v13 = vpack.c.bf16 %v2849_v12, %v2848_v11 }
 0x897   :  { %3343 = vmatpush3.bf16.msra.mxu0 %v3340_v15 }
 0x898   :  { %3345 = vmatprep.subr.bf16.mxu0 %v3344_v18 }
 0x89b   :  { %3347 = vmatpush3.bf16.msra.mxu0 %v3344_v18 }
 0x961   :  { %v3107_v21 = vpop.f32.mrb[10].mxu0 }
 0x962   :  { %v1069_v46 = vadd.f32 %v3107_v21, %v990_v60  ;;  %v1063_v58 = vpop.f32.mrb[11].mxu0 }
 0x963   :  { %v1064_v22 = vadd.f32 %v1063_v58, %v990_v60  ;;  %v1119_v60 = vrot.slane %v3955_v19, %v3730_v28 }
 0x964   :  { %v1073_v44 = vadd.f32 %v1069_v46, %v3748_v40 }
 0x965   :  { %v1072_v23 = vadd.f32 %v1064_v22, %v3744_v38  ;;  %v1112_v38 = vld [vmem:[%s4243_s5] sm:$0xff] }
 0x966   :  { %v1077_v24 = vsel %vm37_vm0, %v1073_v44, 0.0  ;;  %v3324_v43 = vpack.c.bf16 %v1113_v42, %v1112_v38 }
 0x967   :  { %1078 = vadd.xlane.f32.xlu1 %v1077_v24  ;;  %v1074_v25 = vsel %vm37_vm0, %v1072_v23, 0.0 }
 0x968   :  { %1075 = vadd.xlane.f32.xlu0 %v1074_v25  ;;  %3325 = vmatprep.subr.bf16.mxu1 %v3324_v43 }
 0x969   :  { %3327 = vmatpush3.bf16.msra.mxu1 %v3324_v43 }
 0x96a   :  { %3329 = vmatprep.subr.bf16.mxu1 %v3328_v49 }
 0x96d   :  { %3331 = vmatpush3.bf16.msra.mxu1 %v3328_v49 }
 0x9f4   :  { %v1079_v27 = vpop.xlane.xlu1 %1078 }
 0x9f5   :  { %v1081_v31 = vmul.f32 0.03125, %v1079_v27  ;;  %v1076_v32 = vpop.xlane.xlu0 %1075 }
 0x9f6   :  { %v1080_v33 = vmul.f32 0.03125, %v1076_v32 }
 0x9f7   :  { %v1083_v34 = vsub.f32 %v1073_v44, %v1081_v31 }
 0x9f8   :  { %v1082_v35 = vsub.f32 %v1072_v23, %v1080_v33 }
 0x9f9   :  { %v1085_v39 = vmul.f32 %v1083_v34, %v1083_v34 }
 0x9fa   :  { %v1084_v36 = vmul.f32 %v1082_v35, %v1082_v35 }
 0x9fb   :  { %v1089_v40 = vsel %vm37_vm0, %v1085_v39, 0.0 }
 0x9fc   :  { %v1086_v37 = vsel %vm37_vm0, %v1084_v36, 0.0 }
 0x9fd   :  { %1087 = vadd.xlane.f32.xlu0 %v1086_v37 }
 0xa01   :  { %1090 = vadd.xlane.f32.xlu0 %v1089_v40 }
 0xa8a   :  { %v1088_v50 = vpop.xlane.xlu0 %1087 }
 0xa8b   :  { %v1092_v51 = vmul.f32 0.03125, %v1088_v50 }
 0xa8d   :  { %v1094_v52 = vadd.f32 1e-12, %v1092_v51 }
 0xa8e   :  { %v1091_v53 = vpop.xlane.xlu0 %1090 }
 0xa8f   :  { %3574 = vrsqrt.f32 %v1094_v52  ;;  %v1093_v55 = vmul.f32 0.03125, %v1091_v53 }
 0xa91   :  { %v1095_v56 = vadd.f32 1e-12, %v1093_v55 }
 0xa93   :  { %3576 = vrsqrt.f32 %v1095_v56 }
 0xa99   :  { %v3575_v0 = vpop.eup %3574 }
 0xa9a   :  { %v1098_v61 = vmul.f32 %v3575_v0, %v1082_v35 }
 0xa9c   :  { %v1104_v2 = vmul.f32 %v1103_v63, %v1098_v61 }
 0xa9d   :  { %v3577_v3 = vpop.eup %3576 }
 0xa9e   :  { %v1099_v4 = vmul.f32 %v3577_v3, %v1083_v34  ;;  %v1110_v5 = vadd.f32 %v1109_v1, %v1104_v2 }
 0xaa0   :  { %v1105_v6 = vmul.f32 %v1103_v63, %v1099_v4  ;;  %3116 = vmatprep.mubr.msk.f32.mxu1 %vm37_vm0, %v1110_v5 }
 0xaa2   :  { %v1111_v7 = vadd.f32 %v1109_v1, %v1105_v6 }
 0xaa4   :  { %3117 = vmatmul.mubr.msk.f32.vlgmr.msra.gmra.mrb[8].mxu1 %vm37_vm0, %v1111_v7 }
 0xb77   :  { %v3118_v21 = vpop.f32.mrb[8].mxu1 }
 0xb78   :  { %v1198_v46 = vadd.f32 %v3118_v21, %v1119_v60  ;;  %v1192_v58 = vpop.f32.mrb[9].mxu1  ;;  %v3980_v21 = vsub.s32 2, %v3727_v26 }
 0xb79   :  { %v1193_v22 = vadd.f32 %v1192_v58, %v1119_v60 }
 0xb7a   :  { %v1202_v44 = vmul.f32 %v1198_v46, %v1198_v46  ;;  %v1344_v58 = vrot.slane %v3955_v19, %v3980_v21 }
 0xb7b   :  { %v1201_v23 = vmul.f32 %v1193_v22, %v1193_v22 }
 0xb7c   :  { %v1204_v24 = vmul.f32 %v1202_v44, %v1198_v46 }
 0xb7d   :  { %v1203_v25 = vmul.f32 %v1201_v23, %v1193_v22 }
 0xb7e   :  { %v1206_v27 = vmul.f32 0.044715, %v1204_v24 }
 0xb7f   :  { %v1205_v31 = vmul.f32 0.044715, %v1203_v25 }
 0xb80   :  { %v1208_v32 = vadd.f32 %v1206_v27, %v1198_v46 }
 0xb81   :  { %v1207_v33 = vadd.f32 %v1205_v31, %v1193_v22 }
 0xb82   :  { %v1210_v34 = vmul.f32 0.7978846, %v1208_v32 }
 0xb83   :  { %v1209_v35 = vmul.f32 0.7978846, %v1207_v33 }
 0xb84   :  { %3578 = vtanh.f32 %v1210_v34  ;;  %v1361_v34 = vrot.slane %v3955_v19, %v85_v41 }
 0xb85   :  { %3580 = vtanh.f32 %v1209_v35 }
 0xb8e   :  { %v3579_v36 = vpop.eup %3578 }
 0xb8f   :  { %v3581_v37 = vpop.eup %3580  ;;  %v1214_v39 = vadd.f32 1.0, %v3579_v36 }
 0xb90   :  { %v1213_v40 = vadd.f32 1.0, %v3581_v37 }
 0xb91   :  { %v1216_v38 = vmul.f32 0.5, %v1214_v39 }
 0xb92   :  { %v1215_v42 = vmul.f32 0.5, %v1213_v40 }
 0xb93   :  { %v1218_v45 = vmul.f32 %v1216_v38, %v1198_v46  ;;  %v3983_v46 = vsub.s32 3, %v3727_v26  ;;  %v2889_v26 = vld [vmem:[%s4244_s6 + $0x48] sm:$0xff] }
 0xb94   :  { %v1217_v43 = vmul.f32 %v1215_v42, %v1193_v22 }
 0xb95   :  { %v1350_v25 = vrot.slane %v3955_v19, %v3983_v46 }
 0xb96   :  { %3135 = vmatprep.mubr.msk.f32.mxu0 %vm1231_vm5, %v1217_v43 }
 0xb97   :  { %3136 = vmatmul.mubr.msk.f32.vlgmr.msra.gmra.mrb[12].mxu0 %vm1231_vm5, %v1218_v45 }
 0xc6a   :  { %v3137_v49 = vpop.f32.mrb[12].mxu0 }
 0xc6b   :  { %v1310_v50 = vadd.f32 %v3137_v49, %v1230_v48  ;;  %v1304_v51 = vpop.f32.mrb[13].mxu0 }
 0xc6c   :  { %v1305_v52 = vadd.f32 %v1304_v51, %v1230_v48 }
 0xc6d   :  { %v1314_v53 = vadd.f32 %v1310_v50, %v1111_v7 }
 0xc6e   :  { %v1313_v55 = vadd.f32 %v1305_v52, %v1110_v5  ;;  %v2846_v5 = vld [vmem:[%s4239_s3 + $0x20] sm:$0xff] }
 0xc6f   :  { %v1318_v56 = vsel %vm37_vm0, %v1314_v53, 0.0  ;;  %v3348_v29 = vpack.c.bf16 %v2847_v10, %v2846_v5 }
 0xc70   :  { %1319 = vadd.xlane.f32.xlu1 %v1318_v56  ;;  %v1315_v63 = vsel %vm37_vm0, %v1313_v55, 0.0 }
 0xc71   :  { %1316 = vadd.xlane.f32.xlu0 %v1315_v63  ;;  %3349 = vmatprep.subr.bf16.mxu1 %v3348_v29 }
 0xc72   :  { %3351 = vmatpush3.bf16.msra.mxu1 %v3348_v29 }
 0xc73   :  { %3353 = vmatprep.subr.bf16.mxu1 %v3352_v13 }
 0xc76   :  { %3355 = vmatpush3.bf16.msra.mxu1 %v3352_v13 }
 0xcfd   :  { %v1320_v0 = vpop.xlane.xlu1 %1319 }
 0xcfe   :  { %v1322_v61 = vmul.f32 0.03125, %v1320_v0  ;;  %v1317_v1 = vpop.xlane.xlu0 %1316 }
 0xcff   :  { %v1321_v2 = vmul.f32 0.03125, %v1317_v1 }
 0xd00   :  { %v1324_v3 = vsub.f32 %v1314_v53, %v1322_v61 }
 0xd01   :  { %v1323_v4 = vsub.f32 %v1313_v55, %v1321_v2 }
 0xd02   :  { %v1326_v6 = vmul.f32 %v1324_v3, %v1324_v3 }
 0xd03   :  { %v1325_v8 = vmul.f32 %v1323_v4, %v1323_v4 }
 0xd04   :  { %v1330_v9 = vsel %vm37_vm0, %v1326_v6, 0.0 }
 0xd05   :  { %1331 = vadd.xlane.f32.xlu1 %v1330_v9  ;;  %v1327_v7 = vsel %vm37_vm0, %v1325_v8, 0.0 }
 0xd06   :  { %1328 = vadd.xlane.f32.xlu0 %v1327_v7 }
 0xd92   :  { %v1332_v14 = vpop.xlane.xlu1 %1331 }
 0xd93   :  { %v1334_v15 = vmul.f32 0.03125, %v1332_v14  ;;  %v1329_v16 = vpop.xlane.xlu0 %1328 }
 0xd94   :  { %v1333_v17 = vmul.f32 0.03125, %v1329_v16 }
 0xd95   :  { %v1336_v18 = vadd.f32 1e-12, %v1334_v15 }
 0xd96   :  { %v1335_v60 = vadd.f32 1e-12, %v1333_v17 }
 0xd97   :  { %3582 = vrsqrt.f32 %v1336_v18 }
 0xd98   :  { %3584 = vrsqrt.f32 %v1335_v60 }
 0xda1   :  { %v3583_v22 = vpop.eup %3582 }
 0xda2   :  { %v3585_v44 = vpop.eup %3584  ;;  %v1340_v23 = vmul.f32 %v3583_v22, %v1324_v3 }
 0xda3   :  { %v1339_v24 = vmul.f32 %v3585_v44, %v1323_v4 }
 0xda4   :  { %v1346_v27 = vmul.f32 %v1344_v58, %v1340_v23 }
 0xda5   :  { %v1345_v31 = vmul.f32 %v1344_v58, %v1339_v24 }
 0xda6   :  { %v3991_v33 = vadd.f32 %v1350_v25, %v1346_v27 }
 0xda7   :  { %v3989_v32 = vadd.f32 %v1350_v25, %v1345_v31 }
 0xda9   :  { %3146 = vmatprep.mubr.msk.f32.mxu1 %vm37_vm0, %v3989_v32 }
 0xdaa   :  { %3147 = vmatmul.mubr.msk.f32.vlgmr.msra.gmra.mrb[10].mxu1 %vm37_vm0, %v3991_v33 }
 0xe7d   :  { %v3148_v35 = vpop.f32.mrb[10].mxu1 }
 0xe7e   :  { %v4000_v36 = vadd.f32 %v3148_v35, %v1361_v34  ;;  %v1434_v37 = vpop.f32.mrb[11].mxu1 }
 0xe7f   :  { %v4002_v39 = vadd.f32 %v1434_v37, %v1361_v34 }
 0xe81   :  { %3153 = vmatprep.mubr.msk.f32.mxu1 %vm174_vm1, %v4002_v39  ;;  %v4008_v40 = vpack.i.bf16 %v4000_v36, %v4002_v39 }
 0xe83   :  { %3504 = vrot.lane.b32.xlu1 %v4008_v40, %s3637_s22  ;;  %3499 = vrot.lane.b32.xlu0 %v4008_v40, %s3638_s23 }
 0xe87   :  { %1637 = vrot.lane.b32.xlu1 %v4002_v39, %s3639_s24 }
 0xe8b   :  { %1639 = vrot.lane.b32.xlu1 %v4000_v36, %s3639_s24 }
 0xef5   :  { %v3505_v41 = vpop.permute.xlu1 %3504  ;;  %v3500_v38 = vpop.permute.xlu0 %3499 }
 0xef6   :  { %v3507_v42 = vunpack.i.h.bf16 %v3505_v41  ;;  %v3506_v43 = vunpack.i.l.bf16 %v3505_v41  ;;  %v3502_v45 = vunpack.i.h.bf16 %v3500_v38  ;;  %v3501_v48 = vunpack.i.l.bf16 %v3500_v38 }
 0xef8   :  { %v3356_v49 = vpack.c.bf16 %v3502_v45, %v3501_v48  ;;  %v3366_v50 = vpack.c.bf16 %v3507_v42, %v3506_v43 }
 0xef9   :  { %v1638_v51 = vpop.permute.xlu1 %1637 }
 0xefa   :  { %3358 = vmatprep.subr.msk.bf16.mxu1 %vm3776_vm2, %v3356_v49 }
 0xefb   :  { %3361 = vmatpush3.bf16.xpose.msk.msra.mxu1 %vm3776_vm2, %v3356_v49 }
 0xefc   :  { %3368 = vmatprep.subr.msk.bf16.mxu1 %vm3776_vm2, %v3366_v50 }
 0xefd   :  { %v1640_v52 = vpop.permute.xlu1 %1639 }
 0xf02   :  { %3154 = vmatmul.mubr.msk.f32.vlgmr.msra.gmra.mrb[12].mxu1 %vm174_vm1, %v4000_v36 }
 0xf03   :  { %3371 = vmatpush3.bf16.xpose.msk.msra.mxu1 %vm3776_vm2, %v3366_v50  ;;  %3167 = vmatprep.mubr.msk.f32.mxu1 %vm174_vm1, %v1638_v51 }
 0xf0a   :  { %3168 = vmatmul.mubr.msk.f32.vlgmr.msra.gmra.mrb[14].mxu1 %vm174_vm1, %v1640_v52 }
 0xfd5   :  { %v3155_v53 = vpop.f32.mrb[12].mxu1 }
 0xfd6   :  { %v1533_v55 = vmul.f32 0.35355338, %v3155_v53  ;;  %v1523_v56 = vpop.f32.mrb[13].mxu1 }
 0xfd7   :  { %v1532_v63 = vmul.f32 0.35355338, %v1523_v56 }
 0xfd8   :  { %v1535_v0 = vadd.f32 %v1533_v55, %v3795_v59 }
 0xfd9   :  { %v1534_v61 = vadd.f32 %v1532_v63, %v3800_v62 }
 0xfda   :  { %v1538_v1 = vmul.f32 1.442695, %v1535_v0 }
 0xfdb   :  { %v1536_v2 = vmul.f32 1.442695, %v1534_v61 }
 0xfdc   :  { %3586 = vpow2.f32 %v1538_v1 }
 0xfdd   :  { %3588 = vpow2.f32 %v1536_v2  ;;  %v3169_v3 = vpop.f32.mrb[14].mxu1 }
 0xfde   :  { %v1729_v4 = vmul.f32 0.35355338, %v3169_v3  ;;  %v1719_v6 = vpop.f32.mrb[15].mxu1 }
 0xfdf   :  { %v1728_v8 = vmul.f32 0.35355338, %v1719_v6 }
 0xfe0   :  { %v1731_v9 = vadd.f32 %v1729_v4, %v3795_v59 }
 0xfe1   :  { %v1730_v7 = vadd.f32 %v1728_v8, %v3800_v62 }
 0xfe2   :  { %v1734_v5 = vmul.f32 1.442695, %v1731_v9 }
 0xfe3   :  { %v1732_v10 = vmul.f32 1.442695, %v1730_v7 }
 0xfe4   :  { %3590 = vpow2.f32 %v1734_v5 }
 0xfe5   :  { %3592 = vpow2.f32 %v1732_v10 }
 0xfe6   :  { %v3587_v29 = vpop.eup %3586 }
 0xfe7   :  { %v3589_v11 = vpop.eup %3588  ;;  %v1543_v12 = vsel %vm266_vm3, %v3587_v29, 0.0 }
 0xfe8   :  { %1544 = vadd.xlane.f32.xlu1 %v1543_v12  ;;  %v1540_v13 = vsel %vm266_vm3, %v3589_v11, 0.0 }
 0xfe9   :  { %1541 = vadd.xlane.f32.xlu0 %v1540_v13 }
 0xfee   :  { %v3591_v14 = vpop.eup %3590 }
 0xfef   :  { %v1739_v15 = vsel %vm266_vm3, %v3591_v14, 0.0  ;;  %v3593_v16 = vpop.eup %3592 }
 0xff0   :  { %1740 = vadd.xlane.f32.xlu0 %v1739_v15  ;;  %v1736_v17 = vsel %vm266_vm3, %v3593_v16, 0.0 }
 0xff4   :  { %1737 = vadd.xlane.f32.xlu0 %v1736_v17 }
 0xff9   :  { %3514 = vrot.lane.b32.xlu1 %v4008_v40, %s3640_s29 }
 0xffd   :  { %3519 = vrot.lane.b32.xlu1 %v4008_v40, %s3641_s30 }
0x1001   :  { %1833 = vrot.lane.b32.xlu1 %v4002_v39, %s3642_s10 }
0x1005   :  { %3529 = vrot.lane.b32.xlu1 %v4008_v40, %s3643_s11 }
0x100a   :  { %3509 = vrot.lane.b32.xlu0 %v4008_v40, %s3644_s12 }
0x100e   :  { %1835 = vrot.lane.b32.xlu0 %v4000_v36, %s3642_s10 }
0x1075   :  { %v1545_v60 = vpop.xlane.xlu1 %1544 }
0x1076   :  { %v1542_v18 = vpop.xlane.xlu0 %1541 }
0x1077   :  { %3594 = vrcp.f32 %v1542_v18 }
0x1078   :  { %3596 = vrcp.f32 %v1545_v60 }
0x1079   :  { %v3515_v44 = vpop.permute.xlu1 %3514 }
0x107a   :  { %v3517_v27 = vunpack.i.h.bf16 %v3515_v44  ;;  %v3516_v31 = vunpack.i.l.bf16 %v3515_v44 }
0x107c   :  { %v3372_v42 = vpack.c.bf16 %v3517_v27, %v3516_v31 }
0x107d   :  { %v1741_v58 = vpop.xlane.xlu0 %1740  ;;  %v3520_v37 = vpop.permute.xlu1 %3519 }
0x107e   :  { %v3522_v43 = vunpack.i.h.bf16 %v3520_v37  ;;  %v3521_v45 = vunpack.i.l.bf16 %v3520_v37 }
0x1080   :  { %v3376_v52 = vpack.c.bf16 %v3522_v43, %v3521_v45 }
0x1081   :  { %v3595_v22 = vpop.eup %3594  ;;  %v1738_v23 = vpop.xlane.xlu0 %1737 }
0x1082   :  { %3598 = vrcp.f32 %v1738_v23  ;;  %v1548_v24 = vmul.f32 %v3595_v22, %v3589_v11  ;;  %v3597_v38 = vpop.eup %3596  ;;  %v1834_v55 = vpop.permute.xlu1 %1833 }
0x1083   :  { %3600 = vrcp.f32 %v1741_v58  ;;  %v1549_v49 = vmul.f32 %v3597_v38, %v3587_v29 }
0x1084   :  { %3160 = vmatprep.mubr.msk.f32.mxu0 %vm266_vm3, %v1548_v24 }
0x1085   :  { %v3510_v25 = vpop.permute.xlu0 %3509 }
0x1086   :  { %v3512_v34 = vunpack.i.h.bf16 %v3510_v25  ;;  %v3511_v35 = vunpack.i.l.bf16 %v3510_v25 }
0x1088   :  { %v3362_v41 = vpack.c.bf16 %v3512_v34, %v3511_v35 }
0x1089   :  { %v1836_v56 = vpop.permute.xlu0 %1835 }
0x108a   :  { %3363 = vmatprep.subr.bf16.mxu0 %v3362_v41 }
0x108b   :  { %3365 = vmatpush3.bf16.msra.mxu0 %v3362_v41  ;;  %v3634_v41 = vld [vmem:[%s4241_s1 + $0x8] sm:$0xff] }
0x108c   :  { %v3599_v48 = vpop.eup %3598  ;;  %3373 = vmatprep.subr.bf16.mxu0 %v3372_v42 }
0x108d   :  { %v3601_v50 = vpop.eup %3600  ;;  %v1744_v51 = vmul.f32 %v3599_v48, %v3593_v16 }
0x108e   :  { %3161 = vmatmul.mubr.msk.f32.vlgmr.msra.gmra.mrb[14].mxu0 %vm266_vm3, %v1549_v49  ;;  %v1745_v53 = vmul.f32 %v3601_v50, %v3591_v14 }
0x108f   :  { %3375 = vmatpush3.bf16.msra.mxu0 %v3372_v42  ;;  %3174 = vmatprep.mubr.msk.f32.mxu0 %vm266_vm3, %v1744_v51  ;;  %v3635_v42 = vld [vmem:[%s4241_s1] sm:$0xff] }
0x1090   :  { %3378 = vmatprep.subr.msk.bf16.mxu0 %vm3776_vm2, %v3376_v52 }
0x1092   :  { %3175 = vmatmul.mubr.msk.f32.vlgmr.msra.gmra.mrb[16].mxu0 %vm266_vm3, %v1745_v53 }
0x1093   :  { %3181 = vmatprep.mubr.msk.f32.mxu0 %vm174_vm1, %v1834_v55 }
0x1098   :  { %3381 = vmatpush3.bf16.xpose.msk.msra.mxu0 %vm3776_vm2, %v3376_v52 }
0x109f   :  { %3182 = vmatmul.mubr.msk.f32.vlgmr.msra.gmra.mrb[18].mxu0 %vm174_vm1, %v1836_v56 }
0x1161   :  { %v4060_v63 = vpop.f32.mrb[14].mxu0 }
0x1162   :  { %v4062_v0 = vpop.f32.mrb[15].mxu0 }
0x1165   :  { %v4064_v61 = vpop.f32.mrb[16].mxu0 }
0x1166   :  { %v4066_v1 = vpop.f32.mrb[17].mxu0 }
0x1172   :  { %v3183_v2 = vpop.f32.mrb[18].mxu0 }
0x1173   :  { %v1925_v3 = vmul.f32 0.35355338, %v3183_v2  ;;  %v1915_v4 = vpop.f32.mrb[19].mxu0 }
0x1174   :  { %v1924_v6 = vmul.f32 0.35355338, %v1915_v4 }
0x1175   :  { %v1927_v8 = vadd.f32 %v1925_v3, %v3795_v59  ;;  %v3530_v59 = vpop.permute.xlu1 %3529 }
0x1176   :  { %v1926_v9 = vadd.f32 %v1924_v6, %v3800_v62  ;;  %v3532_v15 = vunpack.i.h.bf16 %v3530_v59  ;;  %v3531_v16 = vunpack.i.l.bf16 %v3530_v59 }
0x1177   :  { %v1930_v7 = vmul.f32 1.442695, %v1927_v8  ;;  %v2877_v8 = vld [vmem:[%s4242_s4 + $0x28] sm:$0xff] }
0x1178   :  { %v1928_v5 = vmul.f32 1.442695, %v1926_v9  ;;  %v3386_v58 = vpack.c.bf16 %v3532_v15, %v3531_v16  ;;  %v2878_v9 = vld [vmem:[%s4242_s4 + $0x30] sm:$0xff] }
0x1179   :  { %3602 = vpow2.f32 %v1930_v7 }
0x117a   :  { %3604 = vpow2.f32 %v1928_v5  ;;  %v2879_v5 = vld [vmem:[%s4242_s4 + $0x38] sm:$0xff] }
0x1183   :  { %v3603_v10 = vpop.eup %3602 }
0x1184   :  { %v3605_v29 = vpop.eup %3604  ;;  %v1935_v11 = vsel %vm266_vm3, %v3603_v10, 0.0 }
0x1185   :  { %1936 = vadd.xlane.f32.xlu0 %v1935_v11  ;;  %v1932_v12 = vsel %vm266_vm3, %v3605_v29, 0.0 }
0x1186   :  { %1933 = vadd.xlane.f32.xlu1 %v1932_v12 }
0x1197   :  { %2029 = vrot.lane.b32.xlu1 %v4002_v39, %s3645_s0 }
0x119b   :  { %3524 = vrot.lane.b32.xlu0 %v4008_v40, %s3646_s13 }
0x119f   :  { %2031 = vrot.lane.b32.xlu0 %v4000_v36, %s3645_s0 }
0x1212   :  { %v1937_v62 = vpop.xlane.xlu0 %1936 }
0x1213   :  { %3606 = vrcp.f32 %v1937_v62  ;;  %v1934_v13 = vpop.xlane.xlu1 %1933 }
0x1214   :  { %3608 = vrcp.f32 %v1934_v13 }
0x1216   :  { %v3525_v14 = vpop.permute.xlu0 %3524 }
0x1217   :  { %v3527_v17 = vunpack.i.h.bf16 %v3525_v14  ;;  %v3526_v18 = vunpack.i.l.bf16 %v3525_v14  ;;  %v2030_v23 = vpop.permute.xlu1 %2029 }
0x1219   :  { %v3382_v60 = vpack.c.bf16 %v3527_v17, %v3526_v18 }
0x121a   :  { %v2032_v24 = vpop.permute.xlu0 %2031 }
0x121b   :  { %3383 = vmatprep.subr.bf16.mxu1 %v3382_v60 }
0x121c   :  { %3385 = vmatpush3.bf16.msra.mxu1 %v3382_v60 }
0x121d   :  { %v3607_v39 = vpop.eup %3606  ;;  %3388 = vmatprep.subr.msk.bf16.mxu1 %vm3776_vm2, %v3386_v58 }
0x121e   :  { %v3609_v22 = vpop.eup %3608  ;;  %v1941_v44 = vmul.f32 %v3607_v39, %v3603_v10  ;;  %v3400_v10 = vpack.c.bf16 %v2879_v5, %v2878_v9 }
0x121f   :  { %v1940_v36 = vmul.f32 %v3609_v22, %v3605_v29 }
0x1221   :  { %3188 = vmatprep.mubr.msk.f32.mxu1 %vm266_vm3, %v1940_v36 }
0x1222   :  { %3189 = vmatmul.mubr.msk.f32.vlgmr.msra.gmra.mrb[16].mxu1 %vm266_vm3, %v1941_v44 }
0x1223   :  { %3195 = vmatprep.mubr.msk.f32.mxu1 %vm174_vm1, %v2030_v23 }
0x1225   :  { %3391 = vmatpush3.bf16.xpose.msk.msra.mxu1 %vm3776_vm2, %v3386_v58 }
0x122c   :  { %3196 = vmatmul.mubr.msk.f32.vlgmr.msra.gmra.mrb[18].mxu1 %vm174_vm1, %v2032_v24 }
0x12f5   :  { %v3190_v25 = vpop.f32.mrb[16].mxu1 }
0x12f6   :  { %v2020_v27 = vpop.f32.mrb[17].mxu1 }
0x12ff   :  { %v3197_v31 = vpop.f32.mrb[18].mxu1 }
0x1300   :  { %v2121_v34 = vmul.f32 0.35355338, %v3197_v31  ;;  %v2111_v35 = vpop.f32.mrb[19].mxu1 }
0x1301   :  { %v2120_v37 = vmul.f32 0.35355338, %v2111_v35 }
0x1302   :  { %v2123_v38 = vadd.f32 %v3634_v41, %v2121_v34 }
0x1303   :  { %v2122_v54 = vadd.f32 %v3635_v42, %v2120_v37 }
0x1304   :  { %v2126_v43 = vmul.f32 1.442695, %v2123_v38 }
0x1305   :  { %v2124_v45 = vmul.f32 1.442695, %v2122_v54 }
0x1306   :  { %3610 = vpow2.f32 %v2126_v43  ;;  %v2883_v43 = vld [vmem:[%s4243_s5 + $0x28] sm:$0xff] }
0x1307   :  { %3612 = vpow2.f32 %v2124_v45 }
0x1310   :  { %v3611_v48 = vpop.eup %3610 }
0x1311   :  { %v3613_v49 = vpop.eup %3612  ;;  %v2131_v50 = vsel %vm266_vm3, %v3611_v48, 0.0 }
0x1312   :  { %2132 = vadd.xlane.f32.xlu0 %v2131_v50  ;;  %v2128_v51 = vsel %vm266_vm3, %v3613_v49, 0.0 }
0x1313   :  { %2129 = vadd.xlane.f32.xlu1 %v2128_v51 }
0x1324   :  { %2227 = vrot.lane.b32.xlu1 %v4066_v1, %s3647_s14 }
0x1328   :  { %3534 = vrot.lane.b32.xlu0 %v4008_v40, %s3648_s15  ;;  %2229 = vrot.lane.b32.xlu1 %v4064_v61, %s3647_s14  ;;  %v2876_v61 = vld [vmem:[%s4242_s4 + $0x20] sm:$0xff] }
0x1329   :  { %v3396_v7 = vpack.c.bf16 %v2877_v8, %v2876_v61 }
0x132c   :  { %2235 = vrot.lane.b32.xlu0 %v2020_v27, %s3649_s16  ;;  %2237 = vrot.lane.b32.xlu1 %v3190_v25, %s3649_s16 }
0x139f   :  { %v2133_v52 = vpop.xlane.xlu0 %2132 }
0x13a0   :  { %3614 = vrcp.f32 %v2133_v52  ;;  %v2130_v53 = vpop.xlane.xlu1 %2129 }
0x13a1   :  { %3616 = vrcp.f32 %v2130_v53 }
0x13a3   :  { %v3535_v55 = vpop.permute.xlu0 %3534 }
0x13a4   :  { %v3537_v56 = vunpack.i.h.bf16 %v3535_v55  ;;  %v3536_v2 = vunpack.i.l.bf16 %v3535_v55  ;;  %v2228_v12 = vpop.permute.xlu1 %2227 }
0x13a5   :  { %v2249_v14 = vsel %vm174_vm1, %v4062_v0, %v2228_v12  ;;  %v2263_v0 = vrot.slane %v3955_v19, %v989_v20  ;;  %v2893_v12 = vld [vmem:[%s4244_s6 + $0x68] sm:$0xff] }
0x13a6   :  { %v3392_v3 = vpack.c.bf16 %v3537_v56, %v3536_v2 }
0x13a7   :  { %v2236_v13 = vpop.permute.xlu0 %2235 }
0x13a8   :  { %3393 = vmatprep.subr.bf16.mxu0 %v3392_v3  ;;  %v2230_v59 = vpop.permute.xlu1 %2229  ;;  %v2251_v16 = vsel %vm266_vm3, %v2249_v14, %v2236_v13  ;;  %v2895_v13 = vld [vmem:[%s4244_s6 + $0x78] sm:$0xff] }
0x13a9   :  { %3395 = vmatpush3.bf16.msra.mxu0 %v3392_v3  ;;  %v2250_v17 = vsel %vm174_vm1, %v4060_v63, %v2230_v59  ;;  %v2376_v3 = vrot.slane %v3955_v19, %v1102_v57  ;;  %v2888_v57 = vld [vmem:[%s4244_s6 + $0x40] sm:$0xff] }
0x13aa   :  { %v3615_v1 = vpop.eup %3614  ;;  %3397 = vmatprep.subr.bf16.mxu0 %v3396_v7 }
0x13ab   :  { %v3617_v4 = vpop.eup %3616  ;;  %v2137_v6 = vmul.f32 %v3615_v1, %v3611_v48  ;;  %v2884_v48 = vld [vmem:[%s4243_s5 + $0x30] sm:$0xff] }
0x13ac   :  { %v2136_v40 = vmul.f32 %v3617_v4, %v3613_v49  ;;  %v2238_v62 = vpop.permute.xlu1 %2237  ;;  %v2885_v49 = vld [vmem:[%s4243_s5 + $0x38] sm:$0xff] }
0x13ad   :  { %v2252_v60 = vsel %vm266_vm3, %v2250_v17, %v2238_v62  ;;  %v3408_v50 = vpack.c.bf16 %v2885_v49, %v2884_v48  ;;  %v2894_v62 = vld [vmem:[%s4244_s6 + $0x70] sm:$0xff] }
0x13ae   :  { %3202 = vmatprep.mubr.msk.f32.mxu0 %vm266_vm3, %v2136_v40  ;;  %v2382_v40 = vrot.slane %v3955_v19, %v1108_v47  ;;  %v2890_v47 = vld [vmem:[%s4244_s6 + $0x50] sm:$0xff]  ;;  %v2891_v19 = vld [vmem:[%s4244_s6 + $0x58] sm:$0xff]  ;;  %v3424_v14 = vpack.c.bf16 %v2895_v13, %v2894_v62 }
0x13af   :  { %3203 = vmatmul.mubr.msk.f32.vlgmr.msra.gmra.mrb[20].mxu0 %vm266_vm3, %v2137_v6 }
0x13b0   :  { %3399 = vmatpush3.bf16.msra.mxu0 %v3396_v7 }
0x13b1   :  { %3401 = vmatprep.subr.bf16.mxu0 %v3400_v10 }
0x13b4   :  { %3403 = vmatpush3.bf16.msra.mxu0 %v3400_v10  ;;  %v3412_v10 = vpack.c.bf16 %v2889_v26, %v2888_v57 }
0x13b6   :  { %3413 = vmatprep.subr.bf16.mxu0 %v3412_v10 }
0x1482   :  { %v3204_v29 = vpop.f32.mrb[20].mxu0 }
0x1483   :  { %2245 = vrot.lane.b32.xlu1 %v3204_v29, %s3650_s28  ;;  %v2216_v11 = vpop.f32.mrb[21].mxu0  ;;  %v3416_v29 = vpack.c.bf16 %v2891_v19, %v2890_v47 }
0x1484   :  { %2243 = vrot.lane.b32.xlu0 %v2216_v11, %s3650_s28  ;;  %v2892_v11 = vld [vmem:[%s4244_s6 + $0x60] sm:$0xff] }
0x1485   :  { %v3420_v59 = vpack.c.bf16 %v2893_v12, %v2892_v11 }
0x14f5   :  { %v2246_v15 = vpop.permute.xlu1 %2245 }
0x14f6   :  { %v2244_v18 = vpop.permute.xlu0 %2243  ;;  %v2254_v39 = vsel %vm980_vm4, %v2252_v60, %v2246_v15  ;;  %v4184_v15 = vld [vmem:[%s4240_s2 + $0x10] sm:$0xff] }
0x14f7   :  { %v2253_v58 = vsel %vm980_vm4, %v2251_v16, %v2244_v18  ;;  %v2393_v16 = vrot.slane %v4184_v15, %v3730_v28  ;;  %v2618_v12 = vrot.slane %v4184_v15, %v3980_v21  ;;  %v2624_v13 = vrot.slane %v4184_v15, %v3983_v46 }
0x14f8   :  { %3213 = vmatprep.mubr.msk.f32.mxu0 %vm37_vm0, %v2253_v58 }
0x14f9   :  { %3214 = vmatmul.mubr.msk.f32.vlgmr.msra.gmra.mrb[22].mxu0 %vm37_vm0, %v2254_v39 }
0x14fa   :  { %3415 = vmatpush3.bf16.msra.mxu0 %v3412_v10 }
0x14fb   :  { %3417 = vmatprep.subr.bf16.mxu0 %v3416_v29 }
0x14fe   :  { %3419 = vmatpush3.bf16.msra.mxu0 %v3416_v29 }
0x14ff   :  { %3421 = vmatprep.subr.bf16.mxu0 %v3420_v59 }
0x1502   :  { %3423 = vmatpush3.bf16.msra.mxu0 %v3420_v59 }
0x1503   :  { %3425 = vmatprep.subr.bf16.mxu0 %v3424_v14 }
0x1506   :  { %3427 = vmatpush3.bf16.msra.mxu0 %v3424_v14 }
0x15cc   :  { %v3215_v22 = vpop.f32.mrb[22].mxu0 }
0x15cd   :  { %v2342_v36 = vadd.f32 %v3215_v22, %v2263_v0  ;;  %v2336_v44 = vpop.f32.mrb[23].mxu0 }
0x15ce   :  { %v2337_v23 = vadd.f32 %v2336_v44, %v2263_v0 }
0x15cf   :  { %v2346_v63 = vadd.f32 %v2342_v36, %v3991_v33 }
0x15d0   :  { %v2345_v24 = vadd.f32 %v2337_v23, %v3989_v32  ;;  %v2882_v32 = vld [vmem:[%s4243_s5 + $0x20] sm:$0xff] }
0x15d1   :  { %v2350_v25 = vsel %vm37_vm0, %v2346_v63, 0.0  ;;  %v3404_v45 = vpack.c.bf16 %v2883_v43, %v2882_v32 }
0x15d2   :  { %2351 = vadd.xlane.f32.xlu1 %v2350_v25  ;;  %v2347_v27 = vsel %vm37_vm0, %v2345_v24, 0.0 }
0x15d3   :  { %2348 = vadd.xlane.f32.xlu0 %v2347_v27  ;;  %3405 = vmatprep.subr.bf16.mxu1 %v3404_v45 }
0x15d4   :  { %3407 = vmatpush3.bf16.msra.mxu1 %v3404_v45 }
0x15d5   :  { %3409 = vmatprep.subr.bf16.mxu1 %v3408_v50 }
0x15d8   :  { %3411 = vmatpush3.bf16.msra.mxu1 %v3408_v50 }
0x165f   :  { %v2352_v31 = vpop.xlane.xlu1 %2351 }
0x1660   :  { %v2354_v34 = vmul.f32 0.03125, %v2352_v31  ;;  %v2349_v35 = vpop.xlane.xlu0 %2348 }
0x1661   :  { %v2353_v37 = vmul.f32 0.03125, %v2349_v35 }
0x1662   :  { %v2356_v41 = vsub.f32 %v2346_v63, %v2354_v34 }
0x1663   :  { %v2355_v20 = vsub.f32 %v2345_v24, %v2353_v37 }
0x1664   :  { %v2358_v54 = vmul.f32 %v2356_v41, %v2356_v41 }
0x1665   :  { %v2357_v38 = vmul.f32 %v2355_v20, %v2355_v20 }
0x1666   :  { %v2362_v33 = vsel %vm37_vm0, %v2358_v54, 0.0 }
0x1667   :  { %v2359_v42 = vsel %vm37_vm0, %v2357_v38, 0.0 }
0x1668   :  { %2360 = vadd.xlane.f32.xlu0 %v2359_v42  ;;  %v2505_v42 = vrot.slane %v4184_v15, %v3738_v30  ;;  %v2715_v15 = vld [vmem:[%s4246_s8 + $0x8] sm:$0xff] }
0x166c   :  { %2363 = vadd.xlane.f32.xlu0 %v2362_v33 }
0x16f5   :  { %v2361_v51 = vpop.xlane.xlu0 %2360 }
0x16f6   :  { %v2365_v52 = vmul.f32 0.03125, %v2361_v51 }
0x16f8   :  { %v2367_v53 = vadd.f32 1e-12, %v2365_v52 }
0x16f9   :  { %v2364_v55 = vpop.xlane.xlu0 %2363 }
0x16fa   :  { %3618 = vrsqrt.f32 %v2367_v53  ;;  %v2366_v56 = vmul.f32 0.03125, %v2364_v55 }
0x16fc   :  { %v2368_v2 = vadd.f32 1e-12, %v2366_v56 }
0x16fe   :  { %3620 = vrsqrt.f32 %v2368_v2 }
0x1704   :  { %v3619_v1 = vpop.eup %3618 }
0x1705   :  { %v2371_v4 = vmul.f32 %v3619_v1, %v2355_v20 }
0x1707   :  { %v2377_v6 = vmul.f32 %v2376_v3, %v2371_v4 }
0x1708   :  { %v3621_v61 = vpop.eup %3620 }
0x1709   :  { %v2372_v8 = vmul.f32 %v3621_v61, %v2356_v41  ;;  %v2383_v9 = vadd.f32 %v2382_v40, %v2377_v6  ;;  %v2633_v6 = vld [vmem:[%s4245_s7 + $0x8] sm:$0xff] }
0x170b   :  { %v2378_v7 = vmul.f32 %v2376_v3, %v2372_v8  ;;  %3224 = vmatprep.mubr.msk.f32.mxu1 %vm37_vm0, %v2383_v9  ;;  %v2634_v8 = vld [vmem:[%s4245_s7 + $0x10] sm:$0xff] }
0x170d   :  { %v2384_v5 = vadd.f32 %v2382_v40, %v2378_v7  ;;  %v2632_v40 = vld [vmem:[%s4245_s7] sm:$0xff]  ;;  %v3651_v7 = vmov 0.0|0.0  }
0x170e   :  { %v3429_v61 = vpack.c.bf16 %v2633_v6, %v2632_v40  ;;  %3428 = vmatprep.subr.bf16.mxu1 %v3651_v7 }
0x170f   :  { %3225 = vmatmul.mubr.msk.f32.vlgmr.msra.gmra.mrb[20].mxu1 %vm37_vm0, %v2384_v5 }
0x1710   :  { %3430 = vmatpush3.bf16.msra.mxu1 %v3429_v61 }
0x1711   :  { %3431 = vmatprep.subr.bf16.mxu1 %v3651_v7 }
0x17e2   :  { %v3226_v17 = vpop.f32.mrb[20].mxu1 }
0x17e3   :  { %v2472_v18 = vadd.f32 %v3226_v17, %v2393_v16  ;;  %v2466_v60 = vpop.f32.mrb[21].mxu1 }
0x17e4   :  { %v2467_v58 = vadd.f32 %v2466_v60, %v2393_v16 }
0x17e5   :  { %v2476_v39 = vmul.f32 %v2472_v18, %v2472_v18 }
0x17e6   :  { %v2475_v0 = vmul.f32 %v2467_v58, %v2467_v58 }
0x17e7   :  { %v2478_v22 = vmul.f32 %v2476_v39, %v2472_v18 }
0x17e8   :  { %v2477_v36 = vmul.f32 %v2475_v0, %v2467_v58 }
0x17e9   :  { %v2480_v44 = vmul.f32 0.044715, %v2478_v22  ;;  %v2714_v22 = vld [vmem:[%s4246_s8] sm:$0xff] }
0x17ea   :  { %v2479_v23 = vmul.f32 0.044715, %v2477_v36  ;;  %v2716_v36 = vld [vmem:[%s4246_s8 + $0x10] sm:$0xff] }
0x17eb   :  { %v2482_v63 = vadd.f32 %v2480_v44, %v2472_v18  ;;  %v3435_v44 = vpack.c.bf16 %v2715_v15, %v2714_v22 }
0x17ec   :  { %v2481_v24 = vadd.f32 %v2479_v23, %v2467_v58  ;;  %v2717_v23 = vld [vmem:[%s4246_s8 + $0x18] sm:$0xff]  ;;  %s3654_s8 = smov 32  }
0x17ed   :  { %v2484_v25 = vmul.f32 0.7978846, %v2482_v63  ;;  %v3438_v63 = vpack.c.bf16 %v2717_v23, %v2716_v36 }
0x17ee   :  { %v2483_v27 = vmul.f32 0.7978846, %v2481_v24  ;;  %v3636_v24 = vld [vmem:[%s4240_s2] sm:$0xff] }
0x17ef   :  { %3622 = vtanh.f32 %v2484_v25  ;;  %v2639_v25 = vrot.slane %v3636_v24, %v3980_v21 }
0x17f0   :  { %3624 = vtanh.f32 %v2483_v27 }
0x17f9   :  { %v3623_v31 = vpop.eup %3622 }
0x17fa   :  { %v3625_v34 = vpop.eup %3624  ;;  %v2488_v35 = vadd.f32 1.0, %v3623_v31 }
0x17fb   :  { %v2487_v28 = vadd.f32 1.0, %v3625_v34 }
0x17fc   :  { %v2490_v37 = vmul.f32 0.5, %v2488_v35 }
0x17fd   :  { %v2489_v41 = vmul.f32 0.5, %v2487_v28 }
0x17fe   :  { %v2492_v38 = vmul.f32 %v2490_v37, %v2472_v18 }
0x17ff   :  { %v2491_v20 = vmul.f32 %v2489_v41, %v2467_v58 }
0x1801   :  { %3243 = vmatprep.mubr.msk.f32.mxu0 %vm1231_vm5, %v2491_v20 }
0x1802   :  { %3244 = vmatmul.mubr.msk.f32.vlgmr.msra.gmra.mrb[24].mxu0 %vm1231_vm5, %v2492_v38 }
0x18d5   :  { %v3245_v54 = vpop.f32.mrb[24].mxu0 }
0x18d6   :  { %v2584_v33 = vadd.f32 %v3245_v54, %v2505_v42  ;;  %v2578_v32 = vpop.f32.mrb[25].mxu0 }
0x18d7   :  { %v2579_v43 = vadd.f32 %v2578_v32, %v2505_v42 }
0x18d8   :  { %v2588_v45 = vadd.f32 %v2584_v33, %v2384_v5  ;;  %v3653_v5 = vmov 0.0   ;;  %v2721_v33 = vrot.slane %v3636_v24, %v3983_v46 }
0x18d9   :  { %v2587_v48 = vadd.f32 %v2579_v43, %v2383_v9  ;;  %v2635_v9 = vld [vmem:[%s4245_s7 + $0x18] sm:$0xff]  ;;  %3254 = vmatprep.mubr.msk.f32.mxu1 %vm3652_vm6, %v3653_v5 }
0x18da   :  { %v2592_v49 = vsel %vm37_vm0, %v2588_v45, 0.0  ;;  %v3432_v57 = vpack.c.bf16 %v2635_v9, %v2634_v8 }
0x18db   :  { %2593 = vadd.xlane.f32.xlu0 %v2592_v49  ;;  %v2589_v50 = vsel %vm37_vm0, %v2587_v48, 0.0 }
0x18dc   :  { %2590 = vadd.xlane.f32.xlu1 %v2589_v50  ;;  %3433 = vmatpush3.bf16.msra.mxu1 %v3432_v57 }
0x18dd   :  { %3434 = vmatprep.subr.bf16.mxu1 %v3651_v7 }
0x1968   :  { %v2594_v51 = vpop.xlane.xlu0 %2593 }
0x1969   :  { %v2596_v52 = vmul.f32 0.03125, %v2594_v51  ;;  %v2591_v53 = vpop.xlane.xlu1 %2590 }
0x196a   :  { %v2595_v55 = vmul.f32 0.03125, %v2591_v53 }
0x196b   :  { %v2598_v56 = vsub.f32 %v2588_v45, %v2596_v52 }
0x196c   :  { %v2597_v2 = vsub.f32 %v2587_v48, %v2595_v55 }
0x196d   :  { %v2600_v3 = vmul.f32 %v2598_v56, %v2598_v56 }
0x196e   :  { %v2599_v30 = vmul.f32 %v2597_v2, %v2597_v2 }
0x196f   :  { %v2604_v1 = vsel %vm37_vm0, %v2600_v3, 0.0 }
0x1970   :  { %2605 = vadd.xlane.f32.xlu0 %v2604_v1  ;;  %v2601_v4 = vsel %vm37_vm0, %v2599_v30, 0.0 }
0x1971   :  { %2602 = vadd.xlane.f32.xlu1 %v2601_v4 }
0x19fd   :  { %v2606_v26 = vpop.xlane.xlu0 %2605 }
0x19fe   :  { %v2608_v10 = vmul.f32 0.03125, %v2606_v26  ;;  %v2603_v47 = vpop.xlane.xlu1 %2602 }
0x19ff   :  { %v2607_v19 = vmul.f32 0.03125, %v2603_v47 }
0x1a00   :  { %v2610_v29 = vadd.f32 1e-12, %v2608_v10 }
0x1a01   :  { %v2609_v11 = vadd.f32 1e-12, %v2607_v19 }
0x1a02   :  { %3626 = vrsqrt.f32 %v2610_v29 }
0x1a03   :  { %3628 = vrsqrt.f32 %v2609_v11 }
0x1a0c   :  { %v3627_v59 = vpop.eup %3626 }
0x1a0d   :  { %v3629_v62 = vpop.eup %3628  ;;  %v2614_v14 = vmul.f32 %v3627_v59, %v2598_v56 }
0x1a0e   :  { %v2613_v16 = vmul.f32 %v3629_v62, %v2597_v2 }
0x1a0f   :  { %v2620_v17 = vmul.f32 %v2618_v12, %v2614_v14 }
0x1a10   :  { %v2619_v18 = vmul.f32 %v2618_v12, %v2613_v16 }
0x1a11   :  { %v2626_v60 = vadd.f32 %v2624_v13, %v2620_v17 }
0x1a12   :  { %v2625_v58 = vadd.f32 %v2624_v13, %v2619_v18 }
0x1a13   :  { %v2628_v39 = vrot.slane %v2626_v60, 7 }
0x1a15   :  { %v2631_v0 = vsel %vm2630_vm7, %v2625_v58, %v2628_v39 }
0x1a16   :  { %3255 = vmatmul.mubr.msk.f32.vlgmr.msra.gmra.mrb[22].mxu1 %vm37_vm0, %v2631_v0 }
0x1a17   :  { %3265 = vmatprep.mubr.msk.f32.mxu1 %vm3652_vm6, %v3653_v5  ;;  %3436 = vmatpush3.bf16.msra.mxu1 %v3435_v44 }
0x1a18   :  { %3437 = vmatprep.subr.bf16.mxu1 %v3651_v7 }
0x1a1b   :  { %3439 = vmatpush3.bf16.msra.mxu1 %v3438_v63 }
0x1ae9   :  { %v2709_v27 = vpop.f32.mrb[22].mxu1 }
0x1aea   :  { %v2710_v31 = vadd.f32 %v2709_v27, %v2639_v25  ;;  %v3256_v34 = vpop.f32.mrb[23].mxu1 }
0x1aec   :  { %3630 = vtanh.f32 %v2710_v31 }
0x1af6   :  { %v3631_v35 = vpop.eup %3630 }
0x1af7   :  { %3266 = vmatmul.mubr.msk.f32.vlgmr.msra.gmra.mrb[24].mxu1 %vm37_vm0, %v3631_v35  ;;  %v2795_v28 = vmul.f32 %v3631_v35, %v3631_v35 }
0x1af9   :  { %v2797_v37 = vsel %vm2796_vm8, %v2795_v28, 0.0 }
0x1afa   :  { %2798 = vadd.xlane.f32.xlu0 %v2797_v37 }
0x1b87   :  { %v2799_v41 = vpop.xlane.xlu0 %2798 }
0x1b88   :  { %v2800_v20 = vmax.f32 %v2799_v41, 1e-24 }
0x1b8a   :  { %3632 = vrsqrt.f32 %v2800_v20 }
0x1b94   :  { %v3633_v38 = vpop.eup %3632 }
0x1b95   :  { %v2802_v42 = vmul.f32 %v3633_v38, %v3631_v35 }
0x1b97   :  { %2804 = vrot.lane.b32.xlu1 %v2802_v42, %s3654_s8 }
0x1bca   :  { %v2791_v54 = vpop.f32.mrb[24].mxu1 }
0x1bcb   :  { %v3267_v21 = vpop.f32.mrb[25].mxu1  ;;  %v2792_v32 = vadd.f32 %v2791_v54, %v2721_v33 }
0x1c09   :  { %v2805_v43 = vpop.permute.xlu1 %2804 }
0x1c0a   :  { %v2807_v45 = vsel %vm37_vm0, %v2792_v32, %v2805_v43 }
0x1c0b   :  { %v2808_v48 = vsel %vm1231_vm5, %v2807_v45, 0.0 }
0x1c0c   :  { %2809 = vst [vmem:[%s4247_s9] sm:$0x3] %v2808_v48 }

</bundles_post_ra>
